<compile_context>
chip_gen: v7x
topology: tpu7x:2x2x1
jax: 0.10.0
libtpu: 0.0.40
codegen_flags: <defaults>
</compile_context>

<pallas_src>
import functools
import numpy as np

import jax
import jax.numpy as jnp
from jax.experimental import pallas as pl
from jax.experimental.pallas import tpu as pltpu


def _round_up(x, m):
    return ((x + m - 1) // m) * m


# ----------------------------------------------------------------------------
# Kernel
# ----------------------------------------------------------------------------
def mlp_kernel(*refs):
    """refs = (x_ref, w0, b0, w1, b1, ..., wL, bL, out_ref).

    x and weights are bf16 (MXU operands), biases f32, accumulation f32.
    Hidden activations are carried in bf16 between layers; the final logits
    and the softmax stay in f32.
    """
    x_ref = refs[0]
    out_ref = refs[-1]
    wb_refs = refs[1:-1]
    n_layers = len(wb_refs) // 2

    h = x_ref[...]                                    # bf16 (bb, D)
    logits = None
    for layer in range(n_layers):
        w = wb_refs[2 * layer][...]                   # (in, out), bf16
        b = wb_refs[2 * layer + 1][...]               # (1, out),  f32
        acc = jnp.dot(h, w, preferred_element_type=jnp.float32) + b
        if layer < n_layers - 1:
            # ReLU; carry activation in bf16 (it is the next MXU operand
            # anyway) -> half the vreg/VPU footprint on bf16-VPU chips.
            h = jnp.maximum(acc, 0.0).astype(jnp.bfloat16)
        else:
            logits = acc                              # f32 (bb, padded_classes)
        # Dropout: identity (inference mode).

    # Numerically stable softmax over dim=1.  Padded logits carry a -1e30 bias
    # so exp() underflows to exactly 0 for them.  Exact divide (negligible
    # cost at this size; tighter parity with the f32 reference).
    m = jnp.max(logits, axis=-1, keepdims=True)
    e = jnp.exp(logits - m)
    out_ref[...] = (e / jnp.sum(e, axis=-1, keepdims=True)).astype(out_ref.dtype)


# ----------------------------------------------------------------------------
# Capability / hardware queries (one-time)
# ----------------------------------------------------------------------------
@functools.lru_cache(maxsize=None)
def _single_buffer_supported():
    """Capability probe: does this JAX/Mosaic accept pl.Buffered(1) on a
    grid-invariant input spec?  Probe only — never masks the real kernel."""
    def _copy(x_ref, o_ref):
        o_ref[...] = x_ref[...]

    try:
        f = pl.pallas_call(
            _copy,
            out_shape=jax.ShapeDtypeStruct((16, 128), jnp.float32),
            grid=(2,),
            in_specs=[pl.BlockSpec((8, 128), lambda i: (0, 0),
                                   pipeline_mode=pl.Buffered(1))],
            out_specs=pl.BlockSpec((8, 128), lambda i: (i, 0)),
            compiler_params=pltpu.CompilerParams(
                dimension_semantics=("parallel",)),
        )
        jax.block_until_ready(f(jnp.zeros((8, 128), jnp.float32)))
        return True
    except Exception:
        return False


def _vmem_capacity_bytes():
    try:
        return int(pltpu.get_tpu_info().vmem_capacity_bytes)
    except Exception:
        # Query unavailable: assume the tightest generation (v7x, 64 MiB / TC).
        return 64 * 1024 * 1024


# ----------------------------------------------------------------------------
# Wrapper factory: one-time param prep -> jitted fused forward
# ----------------------------------------------------------------------------
def make_mlp_forward(params, *, num_classes=10, block_batch=512,
                     out_dtype=jnp.float32):
    """params: list of (W, b) with W (in, out) f32 and b (1, out) f32.

    Returns forward(x) -> softmax probabilities (batch, num_classes), f32.
    """
    # ---- one-time: pad final layer to a lane-dense 128-multiple -------------
    padded_classes = _round_up(num_classes, 128)
    w_last, b_last = params[-1]
    fan_in_last = int(w_last.shape[0])
    w_pad = jnp.zeros((fan_in_last, padded_classes), jnp.float32)
    w_pad = w_pad.at[:, :num_classes].set(w_last)
    # Large negative bias on padded logits so softmax puts exactly 0 mass there.
    b_pad = jnp.full((1, padded_classes), -1e30, jnp.float32)
    b_pad = b_pad.at[:, :num_classes].set(jnp.reshape(b_last, (1, num_classes)))
    padded_params = list(params[:-1]) + [(w_pad, b_pad)]

    # ---- one-time: flatten args, cast weights to bf16 (MXU operands) --------
    flat_args = []
    layer_dims = []
    for w, b in padded_params:
        flat_args.append(jnp.asarray(w, jnp.bfloat16))
        flat_args.append(jnp.asarray(b, jnp.float32))
        layer_dims.append((int(w.shape[0]), int(w.shape[1])))
    flat_args = [jax.block_until_ready(a) for a in flat_args]

    D = layer_dims[0][0]
    widest = max(max(di, do) for di, do in layer_dims)
    out_itemsize = jnp.dtype(out_dtype).itemsize

    single_buffer = _single_buffer_supported()
    wbuf = 1 if single_buffer else 2
    weight_bytes = sum(di * do * 2 + do * 4 for di, do in layer_dims)

    # ---- generation-aware VMEM budget ---------------------------------------
    budget = int(0.85 * _vmem_capacity_bytes())
    headroom = 16 * 1024 * 1024

    if wbuf * weight_bytes + headroom > budget:
        # TODO(synk): split layers across multiple pallas_calls when resident
        # weights do not fit this generation's per-core VMEM.
        raise ValueError(
            f"resident weights ({weight_bytes} B x {wbuf} buffers) exceed the "
            f"per-core VMEM budget ({budget} B); layer-splitting not implemented")

    def footprint_bytes(bb):
        io = 2 * bb * D * 2 + 2 * bb * padded_classes * out_itemsize  # dbl-buf x/out
        act = 3 * bb * widest * 4                                     # live f32 temps
        return wbuf * weight_bytes + io + act

    def plan_tile(B):
        bb = min(int(block_batch), _round_up(B, 8))
        # >= 4 grid steps (>= 2 pipelined steps per v7x TensorCore) whenever
        # the batch permits, so prefetch/writeback have something to overlap.
        if B >= 4 * 128:
            bb = min(bb, max(128, _round_up(pl.cdiv(B, 4), 8)))
        bb = max(8, _round_up(bb, 8))
        # Feasibility: shrink the tile until the footprint fits the budget.
        while bb > 8 and footprint_bytes(bb) + headroom > budget:
            bb = max(8, _round_up(bb // 2, 8))
        return bb

    wb_kwargs = dict(pipeline_mode=pl.Buffered(1)) if single_buffer else {}

    @jax.jit
    def forward(x):
        B = x.shape[0]
        assert x.shape[1] == D, f"expected {D} input features, got {x.shape[1]}"
        bb = plan_tile(B)
        B_pad = _round_up(B, bb)
        grid = (B_pad // bb,)

        xb = x.astype(jnp.bfloat16)          # halve the dominant x HBM read
        if B_pad != B:
            xb = jnp.pad(xb, ((0, B_pad - B), (0, 0)))

        in_specs = [pl.BlockSpec((bb, D), lambda i: (i, 0))]
        for di, do in layer_dims:
            # Grid-invariant weights/biases: single VMEM buffer when supported.
            in_specs.append(pl.BlockSpec((di, do), lambda i: (0, 0), **wb_kwargs))
            in_specs.append(pl.BlockSpec((1, do), lambda i: (0, 0), **wb_kwargs))
        out_spec = pl.BlockSpec((bb, padded_classes), lambda i: (i, 0))

        vmem_limit = int(min(budget, footprint_bytes(bb) + headroom))
        flops = 2 * B_pad * sum(di * do for di, do in layer_dims)
        cost = pl.CostEstimate(
            flops=flops,
            transcendentals=B_pad * padded_classes,          # softmax exp
            bytes_accessed=(B_pad * D * 2 + weight_bytes
                            + B_pad * padded_classes * out_itemsize),
        )

        out = pl.pallas_call(
            mlp_kernel,
            out_shape=jax.ShapeDtypeStruct((B_pad, padded_classes), out_dtype),
            grid_spec=pl.GridSpec(grid=grid, in_specs=in_specs,
                                  out_specs=out_spec),
            compiler_params=pltpu.CompilerParams(
                dimension_semantics=("parallel",),
                vmem_limit_bytes=vmem_limit,
            ),
            cost_estimate=cost,
        )(xb, *flat_args)
        return out[:B, :num_classes].astype(jnp.float32)

    return forward


# ----------------------------------------------------------------------------
# Deterministic parameter construction (mirrors MLPComplex.__init__)
# ----------------------------------------------------------------------------
def build_params(key, *, groups, layers_per_group, initial_units, final_units,
                 input_dim, num_classes=10):
    units_per_group = np.linspace(initial_units, final_units, groups).astype(int)

    layer_dims = []
    in_size = input_dim
    for units in units_per_group:
        for _ in range(layers_per_group):
            layer_dims.append((in_size, int(units)))
            in_size = int(units)
    layer_dims.append((final_units, num_classes))   # final Linear(final_units, 10)

    params = []
    for (fan_in, fan_out) in layer_dims:
        key, kw, kb = jax.random.split(key, 3)
        # he_uniform: U(-sqrt(6/fan_in), sqrt(6/fan_in))
        bound = float(np.sqrt(6.0 / fan_in))
        w = jax.random.uniform(kw, (fan_in, fan_out), jnp.float32,
                               minval=-bound, maxval=bound)
        b_bound = float(1.0 / np.sqrt(fan_in))
        b = jax.random.uniform(kb, (1, fan_out), jnp.float32,
                               minval=-b_bound, maxval=b_bound)
        params.append((w, b))
    return params


# ----------------------------------------------------------------------------
# Pure-JAX reference (f32 throughout, for sanity checking)
# ----------------------------------------------------------------------------
def mlp_reference(x, params):
    h = x.astype(jnp.float32)
    for i, (w, b) in enumerate(params):
        h = h @ w + b
        if i < len(params) - 1:
            h = jnp.maximum(h, 0.0)
    return jax.nn.softmax(h, axis=1)


if __name__ == "__main__":
    # Small config consistent with the module (groups=2, layers_per_group=2).
    GROUPS = 2
    LAYERS_PER_GROUP = 2
    INITIAL_UNITS = 256
    FINAL_UNITS = 128
    INPUT_DIM = 128
    BATCH = 512           # -> bb=128, grid=(4,): >=2 pipelined steps per v7x core

    key = jax.random.PRNGKey(0)
    key, kx = jax.random.split(key)
    x = jax.random.normal(kx, (BATCH, INPUT_DIM), jnp.float32)

    params = build_params(
        key,
        groups=GROUPS,
        layers_per_group=LAYERS_PER_GROUP,
        initial_units=INITIAL_UNITS,
        final_units=FINAL_UNITS,
        input_dim=INPUT_DIM,
    )

    forward = make_mlp_forward(params, block_batch=512)

    out = jax.block_until_ready(forward(x))
    ref = jax.block_until_ready(mlp_reference(x, params))

    assert out.shape == (BATCH, 10)
    # bf16 matmul operands / bf16 hidden activations (f32 accumulation) vs f32
    # reference -> loosened tolerance (deliberate accuracy/throughput trade-off).
    np.testing.assert_allclose(np.asarray(out), np.asarray(ref),
                               rtol=0.0, atol=3e-2)
    # rows of a softmax sum to 1 (exact f32 divide in the kernel)
    np.testing.assert_allclose(np.asarray(out).sum(axis=1),
                               np.ones(BATCH), rtol=0.0, atol=1e-3)

    print("KERNEL_OK")
</pallas_src>

<mosaic_0001>
module attributes {stable_mosaic.version = 11 : i64} {
  func.func @_copy(%arg0: i32, %arg1: memref<8x128xf32, #tpu.memory_space<vmem>>, %arg2: memref<8x128xf32, #tpu.memory_space<vmem>>) attributes {dimension_semantics = [#tpu.dimension_semantics<parallel>], iteration_bounds = array<i64: 2>, scalar_prefetch = 0 : i64, scratch_operands = 0 : i64, tpu.core_type = #tpu.core_type<tc>, window_params = [{pipeline_mode = #tpu.pipeline_mode<synchronous>, transform_indices = @transform_0, window_bounds = array<i64: 8, 128>}, {transform_indices = @transform_1, window_bounds = array<i64: 8, 128>}]} {
    %c0 = arith.constant 0 : index
    %c0_0 = arith.constant 0 : index
    %0 = vector.load %arg1[%c0, %c0_0] : memref<8x128xf32, #tpu.memory_space<vmem>>, vector<8x128xf32>
    %c0_1 = arith.constant 0 : index
    %c0_2 = arith.constant 0 : index
    %1 = vector.load %arg2[%c0_1, %c0_2] : memref<8x128xf32, #tpu.memory_space<vmem>>, vector<8x128xf32>
    tpu.vector_store %arg2[%c0_1, %c0_2], %0 {strides = array<i32>} : memref<8x128xf32, #tpu.memory_space<vmem>>, vector<8x128xf32>,
    return
  }
  func.func @transform_0(%arg0: i32) -> (i32, i32) {
    %c0_i32 = arith.constant 0 : i32
    %c0_i32_0 = arith.constant 0 : i32
    %c0_i32_1 = arith.constant 0 : i32
    return %c0_i32, %c0_i32_0 : i32, i32
  }
  func.func @transform_1(%arg0: i32) -> (i32, i32) {
    %c0_i32 = arith.constant 0 : i32
    %c0_i32_0 = arith.constant 0 : i32
    return %arg0, %c0_i32 : i32, i32
  }
}

module attributes {stable_mosaic.version = 11 : i64} {
  func.func @mlp_kernel(%arg0: i32, %arg1: memref<128x128xbf16, #tpu.memory_space<vmem>>, %arg2: memref<128x256xbf16, #tpu.memory_space<vmem>>, %arg3: memref<1x256xf32, #tpu.memory_space<vmem>>, %arg4: memref<256x256xbf16, #tpu.memory_space<vmem>>, %arg5: memref<1x256xf32, #tpu.memory_space<vmem>>, %arg6: memref<256x128xbf16, #tpu.memory_space<vmem>>, %arg7: memref<1x128xf32, #tpu.memory_space<vmem>>, %arg8: memref<128x128xbf16, #tpu.memory_space<vmem>>, %arg9: memref<1x128xf32, #tpu.memory_space<vmem>>, %arg10: memref<128x128xbf16, #tpu.memory_space<vmem>>, %arg11: memref<1x128xf32, #tpu.memory_space<vmem>>, %arg12: memref<128x128xf32, #tpu.memory_space<vmem>>) attributes {dimension_semantics = [#tpu.dimension_semantics<parallel>], iteration_bounds = array<i64: 4>, scalar_prefetch = 0 : i64, scratch_operands = 0 : i64, tpu.core_type = #tpu.core_type<tc>, window_params = [{transform_indices = @transform_0, window_bounds = array<i64: 128, 128>}, {pipeline_mode = #tpu.pipeline_mode<synchronous>, transform_indices = @transform_1, window_bounds = array<i64: 128, 256>}, {pipeline_mode = #tpu.pipeline_mode<synchronous>, transform_indices = @transform_2, window_bounds = array<i64: 1, 256>}, {pipeline_mode = #tpu.pipeline_mode<synchronous>, transform_indices = @transform_3, window_bounds = array<i64: 256, 256>}, {pipeline_mode = #tpu.pipeline_mode<synchronous>, transform_indices = @transform_4, window_bounds = array<i64: 1, 256>}, {pipeline_mode = #tpu.pipeline_mode<synchronous>, transform_indices = @transform_5, window_bounds = array<i64: 256, 128>}, {pipeline_mode = #tpu.pipeline_mode<synchronous>, transform_indices = @transform_6, window_bounds = array<i64: 1, 128>}, {pipeline_mode = #tpu.pipeline_mode<synchronous>, transform_indices = @transform_7, window_bounds = array<i64: 128, 128>}, {pipeline_mode = #tpu.pipeline_mode<synchronous>, transform_indices = @transform_8, window_bounds = array<i64: 1, 128>}, {pipeline_mode = #tpu.pipeline_mode<synchronous>, transform_indices = @transform_9, window_bounds = array<i64: 128, 128>}, {pipeline_mode = #tpu.pipeline_mode<synchronous>, transform_indices = @transform_10, window_bounds = array<i64: 1, 128>}, {transform_indices = @transform_11, window_bounds = array<i64: 128, 128>}]} {
    %c0 = arith.constant 0 : index
    %c0_0 = arith.constant 0 : index
    %0 = vector.load %arg1[%c0, %c0_0] : memref<128x128xbf16, #tpu.memory_space<vmem>>, vector<128x128xbf16>
    %c0_1 = arith.constant 0 : index
    %c0_2 = arith.constant 0 : index
    %1 = vector.load %arg2[%c0_1, %c0_2] : memref<128x256xbf16, #tpu.memory_space<vmem>>, vector<128x256xbf16>
    %c0_3 = arith.constant 0 : index
    %c0_4 = arith.constant 0 : index
    %2 = vector.load %arg3[%c0_3, %c0_4] : memref<1x256xf32, #tpu.memory_space<vmem>>, vector<1x256xf32>
    %cst = arith.constant dense<0.000000e+00> : vector<128x256xf32>
    %3 = tpu.matmul %0, %1, %cst {dimension_numbers = #tpu.dot_dimension_numbers<[1], [0], [0], [1], [0, 0, 1, 1], [], []>} : vector<128x128xbf16>, vector<128x256xbf16>, vector<128x256xf32> -> vector<128x256xf32>
    %4 = vector.broadcast %2 : vector<1x256xf32> to vector<128x256xf32>
    %5 = arith.addf %3, %4 : vector<128x256xf32>
    %cst_5 = arith.constant 0.000000e+00 : f32
    %6 = vector.broadcast %cst_5 : f32 to vector<128x256xf32>
    %7 = arith.maximumf %5, %6 : vector<128x256xf32>
    %8 = arith.truncf %7 : vector<128x256xf32> to vector<128x256xbf16>
    %c0_6 = arith.constant 0 : index
    %c0_7 = arith.constant 0 : index
    %9 = vector.load %arg4[%c0_6, %c0_7] : memref<256x256xbf16, #tpu.memory_space<vmem>>, vector<256x256xbf16>
    %c0_8 = arith.constant 0 : index
    %c0_9 = arith.constant 0 : index
    %10 = vector.load %arg5[%c0_8, %c0_9] : memref<1x256xf32, #tpu.memory_space<vmem>>, vector<1x256xf32>
    %cst_10 = arith.constant dense<0.000000e+00> : vector<128x256xf32>
    %11 = tpu.matmul %8, %9, %cst_10 {dimension_numbers = #tpu.dot_dimension_numbers<[1], [0], [0], [1], [0, 0, 1, 1], [], []>} : vector<128x256xbf16>, vector<256x256xbf16>, vector<128x256xf32> -> vector<128x256xf32>
    %12 = vector.broadcast %10 : vector<1x256xf32> to vector<128x256xf32>
    %13 = arith.addf %11, %12 : vector<128x256xf32>
    %cst_11 = arith.constant 0.000000e+00 : f32
    %14 = vector.broadcast %cst_11 : f32 to vector<128x256xf32>
    %15 = arith.maximumf %13, %14 : vector<128x256xf32>
    %16 = arith.truncf %15 : vector<128x256xf32> to vector<128x256xbf16>
    %c0_12 = arith.constant 0 : index
    %c0_13 = arith.constant 0 : index
    %17 = vector.load %arg6[%c0_12, %c0_13] : memref<256x128xbf16, #tpu.memory_space<vmem>>, vector<256x128xbf16>
    %c0_14 = arith.constant 0 : index
    %c0_15 = arith.constant 0 : index
    %18 = vector.load %arg7[%c0_14, %c0_15] : memref<1x128xf32, #tpu.memory_space<vmem>>, vector<1x128xf32>
    %cst_16 = arith.constant dense<0.000000e+00> : vector<128x128xf32>
    %19 = tpu.matmul %16, %17, %cst_16 {dimension_numbers = #tpu.dot_dimension_numbers<[1], [0], [0], [1], [0, 0, 1, 1], [], []>} : vector<128x256xbf16>, vector<256x128xbf16>, vector<128x128xf32> -> vector<128x128xf32>
    %20 = vector.broadcast %18 : vector<1x128xf32> to vector<128x128xf32>
    %21 = arith.addf %19, %20 : vector<128x128xf32>
    %cst_17 = arith.constant 0.000000e+00 : f32
    %22 = vector.broadcast %cst_17 : f32 to vector<128x128xf32>
    %23 = arith.maximumf %21, %22 : vector<128x128xf32>
    %24 = arith.truncf %23 : vector<128x128xf32> to vector<128x128xbf16>
    %c0_18 = arith.constant 0 : index
    %c0_19 = arith.constant 0 : index
    %25 = vector.load %arg8[%c0_18, %c0_19] : memref<128x128xbf16, #tpu.memory_space<vmem>>, vector<128x128xbf16>
    %c0_20 = arith.constant 0 : index
    %c0_21 = arith.constant 0 : index
    %26 = vector.load %arg9[%c0_20, %c0_21] : memref<1x128xf32, #tpu.memory_space<vmem>>, vector<1x128xf32>
    %cst_22 = arith.constant dense<0.000000e+00> : vector<128x128xf32>
    %27 = tpu.matmul %24, %25, %cst_22 {dimension_numbers = #tpu.dot_dimension_numbers<[1], [0], [0], [1], [0, 0, 1, 1], [], []>} : vector<128x128xbf16>, vector<128x128xbf16>, vector<128x128xf32> -> vector<128x128xf32>
    %28 = vector.broadcast %26 : vector<1x128xf32> to vector<128x128xf32>
    %29 = arith.addf %27, %28 : vector<128x128xf32>
    %cst_23 = arith.constant 0.000000e+00 : f32
    %30 = vector.broadcast %cst_23 : f32 to vector<128x128xf32>
    %31 = arith.maximumf %29, %30 : vector<128x128xf32>
    %32 = arith.truncf %31 : vector<128x128xf32> to vector<128x128xbf16>
    %c0_24 = arith.constant 0 : index
    %c0_25 = arith.constant 0 : index
    %33 = vector.load %arg10[%c0_24, %c0_25] : memref<128x128xbf16, #tpu.memory_space<vmem>>, vector<128x128xbf16>
    %c0_26 = arith.constant 0 : index
    %c0_27 = arith.constant 0 : index
    %34 = vector.load %arg11[%c0_26, %c0_27] : memref<1x128xf32, #tpu.memory_space<vmem>>, vector<1x128xf32>
    %cst_28 = arith.constant dense<0.000000e+00> : vector<128x128xf32>
    %35 = tpu.matmul %32, %33, %cst_28 {dimension_numbers = #tpu.dot_dimension_numbers<[1], [0], [0], [1], [0, 0, 1, 1], [], []>} : vector<128x128xbf16>, vector<128x128xbf16>, vector<128x128xf32> -> vector<128x128xf32>
    %36 = vector.broadcast %34 : vector<1x128xf32> to vector<128x128xf32>
    %37 = arith.addf %35, %36 : vector<128x128xf32>
    %cst_29 = arith.constant dense<0xFF800000> : vector<128xf32>
    %38 = vector.multi_reduction <maximumf>, %37, %cst_29 [1] : vector<128x128xf32> to vector<128xf32>
    %39 = vector.shape_cast %38 : vector<128xf32> to vector<128x1xf32>
    %40 = vector.broadcast %39 : vector<128x1xf32> to vector<128x128xf32>
    %41 = arith.subf %37, %40 : vector<128x128xf32>
    %42 = math.exp %41 : vector<128x128xf32>
    %cst_30 = arith.constant dense<0.000000e+00> : vector<128xf32>
    %43 = vector.multi_reduction <add>, %42, %cst_30 [1] : vector<128x128xf32> to vector<128xf32>
    %44 = vector.shape_cast %43 : vector<128xf32> to vector<128x1xf32>
    %45 = vector.broadcast %44 : vector<128x1xf32> to vector<128x128xf32>
    %46 = arith.divf %42, %45 : vector<128x128xf32>
    %c0_31 = arith.constant 0 : index
    %c0_32 = arith.constant 0 : index
    %47 = vector.load %arg12[%c0_31, %c0_32] : memref<128x128xf32, #tpu.memory_space<vmem>>, vector<128x128xf32>
    tpu.vector_store %arg12[%c0_31, %c0_32], %46 {strides = array<i32>} : memref<128x128xf32, #tpu.memory_space<vmem>>, vector<128x128xf32>,
    return
  }
  func.func @transform_0(%arg0: i32) -> (i32, i32) {
    %c0_i32 = arith.constant 0 : i32
    %c0_i32_0 = arith.constant 0 : i32
    return %arg0, %c0_i32 : i32, i32
  }
  func.func @transform_1(%arg0: i32) -> (i32, i32) {
    %c0_i32 = arith.constant 0 : i32
    %c0_i32_0 = arith.constant 0 : i32
    %c0_i32_1 = arith.constant 0 : i32
    return %c0_i32, %c0_i32_0 : i32, i32
  }
  func.func @transform_2(%arg0: i32) -> (i32, i32) {
    %c0_i32 = arith.constant 0 : i32
    %c0_i32_0 = arith.constant 0 : i32
    %c0_i32_1 = arith.constant 0 : i32
    return %c0_i32, %c0_i32_0 : i32, i32
  }
  func.func @transform_3(%arg0: i32) -> (i32, i32) {
    %c0_i32 = arith.constant 0 : i32
    %c0_i32_0 = arith.constant 0 : i32
    %c0_i32_1 = arith.constant 0 : i32
    return %c0_i32, %c0_i32_0 : i32, i32
  }
  func.func @transform_4(%arg0: i32) -> (i32, i32) {
    %c0_i32 = arith.constant 0 : i32
    %c0_i32_0 = arith.constant 0 : i32
    %c0_i32_1 = arith.constant 0 : i32
    return %c0_i32, %c0_i32_0 : i32, i32
  }
  func.func @transform_5(%arg0: i32) -> (i32, i32) {
    %c0_i32 = arith.constant 0 : i32
    %c0_i32_0 = arith.constant 0 : i32
    %c0_i32_1 = arith.constant 0 : i32
    return %c0_i32, %c0_i32_0 : i32, i32
  }
  func.func @transform_6(%arg0: i32) -> (i32, i32) {
    %c0_i32 = arith.constant 0 : i32
    %c0_i32_0 = arith.constant 0 : i32
    %c0_i32_1 = arith.constant 0 : i32
    return %c0_i32, %c0_i32_0 : i32, i32
  }
  func.func @transform_7(%arg0: i32) -> (i32, i32) {
    %c0_i32 = arith.constant 0 : i32
    %c0_i32_0 = arith.constant 0 : i32
    %c0_i32_1 = arith.constant 0 : i32
    return %c0_i32, %c0_i32_0 : i32, i32
  }
  func.func @transform_8(%arg0: i32) -> (i32, i32) {
    %c0_i32 = arith.constant 0 : i32
    %c0_i32_0 = arith.constant 0 : i32
    %c0_i32_1 = arith.constant 0 : i32
    return %c0_i32, %c0_i32_0 : i32, i32
  }
  func.func @transform_9(%arg0: i32) -> (i32, i32) {
    %c0_i32 = arith.constant 0 : i32
    %c0_i32_0 = arith.constant 0 : i32
    %c0_i32_1 = arith.constant 0 : i32
    return %c0_i32, %c0_i32_0 : i32, i32
  }
  func.func @transform_10(%arg0: i32) -> (i32, i32) {
    %c0_i32 = arith.constant 0 : i32
    %c0_i32_0 = arith.constant 0 : i32
    %c0_i32_1 = arith.constant 0 : i32
    return %c0_i32, %c0_i32_0 : i32, i32
  }
  func.func @transform_11(%arg0: i32) -> (i32, i32) {
    %c0_i32 = arith.constant 0 : i32
    %c0_i32_0 = arith.constant 0 : i32
    return %arg0, %c0_i32 : i32, i32
  }
}

</mosaic_0001>

<bundles_post_ra>
// kernel: tpu_custom_call.1
= control target key start
LH: loop header
LB: loop body
LE: loop exit
PB: predicated region body
PF: predicated region fallthrough
CT: control target
= control target key end

     0   :  { %6 = vsyncpa [#allocation3], 0  ;;  %s481_s0 = inlined_call_operand.hbm [shape: f32[8,128], index: 0, kind: input, shape index: {}]   ;;  %s482_s1 = inlined_call_operand.hbm [shape: f32[16,128], index: 1, kind: output, shape index: {}]  }
   0x1   :  { %7 = vsyncpa [#allocation4], 0 }
   0x2   :  { %9 = vsyncpa [#allocation4 + $0x1], 0  ;;  %s351_s6 = smov 0   ;;  %s353_s7 = smov 0  }
   0x3   :  { %s355_s8 = smov 0   ;;  %s357_s9 = smov 0  }
   0x4 LB: > { %s372_s10 = sadd.s32 4294967295, %s337_s9   ;;  %s183_s11 = sadd.s32 4294967294, %s337_s9   ;;  %s337_s9 = sphi %s357_s9, %s498_s9   ;;  %s333_s8 = sphi %s355_s8, %s497_s8   ;;  %s329_s7 = sphi %s353_s7, %s496_s7   ;;  %s325_s6 = sphi %s351_s6, %s495_s6  }
   0x5   : > { %s376_s12 = sadd.s32 1, %s337_s9   ;;  %s43_s13 = sadd.s32 1, %s333_s8 }
   0x6   : > { %s40_s14 = ssub.s32 %s337_s9, %s376_s12  ;;  %p53_p0 = scmp.ne.s32.totalorder %s333_s8, %s329_s7 }
   0x7   : > { %p41_p1 = scmp.eq.s32.totalorder %s40_s14, 0  ;;  %p54_p2 = scmp.eq.s32.totalorder %s372_s10, 1 }
   0x8   : > { %p59_p3 = scmp.ne.s32.totalorder %s329_s7, %s325_s6  ;;  %p60_p4 = scmp.eq.s32.totalorder %s183_s11, 1 }
   0x9   : > { %s387_s15 = scalar_select %p41_p1, %s333_s8, %s43_s13  }
   0xa   : > { %p389_p5 = por %p54_p2, %p53_p0  ;;  %p393_p6 = por %p60_p4, %p59_p3 }
   0xb   : > { %p184_p7 = scmp.ge.s32.totalorder %s337_s9, 1  ;;  %p67_p8 = scmp.lt.s32.totalorder %s337_s9, 3 }
   0xc   : > { %s486_s16 = scalar_select %p389_p5, 1, 0 }
   0xd   : > { %s487_s17 = scalar_select %p393_p6, 1, 0 }
   0xe   : > { %p483_p9 = scmp.eq.s32.totalorder %s372_s10, 0  ;;  %p400_p10 = pnand %p184_p7, %p67_p8 }
   0xf   : > { %s339_s19 = smov [#allocation2]   ;;  %s243_s24 = scalar_lea.hbm %s481_s0, 128 }
  0x10   : > { %s488_s18 = scalar_select %p400_p10, 1, 0 }
  0x11   : > { %s80_s20 = sshll.u32 %s339_s19, 4  ;;  %p199_p11 = pneg %p400_p10  ;;  %s81_s20 = int_to_ptr.vmem [resolvable:$true] %s80_s20 }
  0x12   : > { %p244_p13 = scmp.ne.s32.totalorder %s481_s0, %s243_s24  ;;  %p250_p3 = scmp.lt.u32.totalorder %s243_s24, %s481_s0 }
  0x13   : > { %p408_p12 = pnand %p483_p9, %p199_p11 }
  0x15   : > { %p245_p0 = pneg %p408_p12 }
  0x17   : > { %p246_p1 = pnand %p245_p0, %p244_p13 }
  0x19   : > { %p247_p2 = pneg %p246_p1 }
  0x1b   : > { %p252_p4 = pnand %p250_p3, %p247_p2 }
  0x1d   : > { %255 = shalt.err (!%p252_p4)
}
  0x1e   : > { %s256_s29 = scalar_lea.vmem %s81_s20, 128  ;;  %p264_p9 = scmp.lt.s32.totalorder %s81_s20, %s81_s20 }
  0x1f   : > { %p257_p7 = scmp.ne.s32.totalorder %s81_s20, %s256_s29  ;;  %p265_p6 = scmp.lt.s32.totalorder %s256_s29, %s256_s29 }
  0x21   : > { %p259_p8 = pnand %p257_p7, %p245_p0  ;;  %p266_p5 = por %p265_p6, %p264_p9 }
  0x23   : > { %p260_p11 = pneg %p259_p8 }
  0x25   : > { %p267_p10 = pnand %p266_p5, %p260_p11 }
  0x27   : > { %270 = shalt.err (!%p267_p10)
}
  0x28   : > { %202 = dma.hbm_to_vmem [thread:$0]  (!%p408_p12), %s481_s0, 128, %s81_s20, [#allocation3]  }
  0x29   : > { %p490_p13 = scmp.ne.s32.totalorder %s488_s18, 0 }
  0x2a   : > { %p491_p1 = scmp.eq.s32.totalorder (!%p490_p13), %s372_s10, 0 }
  0x2b   : > { %93 = sbr.rel (%p490_p13) target bundleno = 77 (0x4d), region = 24 }
  0x32   : > { %316 = dma.done.wait (%p491_p1), [#allocation3], 128   ;;  %p492_p0 = pmov %p491_p1 }
  0x33   : > { %s105_s3 = sand.u32 1, %s329_s7   ;;  %s190_s13 = sshll.u32 %s372_s10, 7  ;;  %v108_v0 = vld [vmem:[#allocation2] sm:$0xff] }
  0x34   : > { %318 = vsyncadd (%p492_p0), [#allocation3], 4294967168  ;;  %s188_s4 = sshll.u32 %s105_s3, 3  ;;  %s441_s18 = scalar_lea.hbm %s482_s1, %s190_s13 }
  0x35   : > { %s107_s5 = scalar_lea.vmem [#allocation5], %s188_s4  ;;  %s111_s20 = scalar_lea.sflag [#allocation4], %s105_s3 }
  0x36   : > { %s124_s11 = sshll.u32 %s107_s5, 4  ;;  %109 = vst [vmem:[%s107_s5] sm:$0xff] %v108_v0  ;;  %p493_p6 = scmp.ne.s32.totalorder %s486_s16, 0  ;;  %s436_s11 = int_to_ptr.vmem [resolvable:$true] %s124_s11 }
  0x37   : > { %s271_s21 = scalar_lea.vmem %s436_s11, 128  ;;  %s340_s22 = smov [#allocation5]  }
  0x38   : > { %p272_p5 = scmp.ne.s32.totalorder %s436_s11, %s271_s21  ;;  %s275_s10 = sshll.u32 %s340_s22, 4  ;;  %s276_s10 = int_to_ptr.vmem [resolvable:$false] %s275_s10 }
  0x39   : > { %s277_s23 = scalar_lea.vmem %s276_s10, 256  ;;  %p278_p12 = scmp.lt.s32.totalorder %s436_s11, %s276_s10 }
  0x3a   : > { %p273_p9 = pnand %p272_p5, %p493_p6  ;;  %p279_p2 = scmp.lt.s32.totalorder %s277_s23, %s271_s21 }
  0x3c   : > { %p274_p10 = pneg %p273_p9  ;;  %p280_p3 = por %p279_p2, %p278_p12 }
  0x3e   : > { %p281_p4 = pnand %p280_p3, %p274_p10 }
  0x40   : > { %284 = shalt.err (!%p281_p4)
}
  0x41   : > { %s285_s24 = scalar_lea.hbm %s441_s18, 128  ;;  %s289_s27 = scalar_lea.hbm %s482_s1, 256 }
  0x42   : > { %p286_p7 = scmp.ne.s32.totalorder %s441_s18, %s285_s24  ;;  %p290_p13 = scmp.lt.u32.totalorder %s441_s18, %s482_s1 }
  0x43   : > { %p291_p1 = scmp.lt.u32.totalorder %s289_s27, %s285_s24  ;;  %p293_p5 = scmp.lt.u32.totalorder %s285_s24, %s441_s18 }
  0x44   : > { %p287_p8 = pnand %p286_p7, %p493_p6 }
  0x45   : > { %p292_p0 = por %p291_p1, %p290_p13 }
  0x46   : > { %p288_p11 = pneg %p287_p8 }
  0x47   : > { %p294_p9 = por %p293_p5, %p292_p0 }
  0x49   : > { %p295_p10 = pnand %p294_p9, %p288_p11 }
  0x4b   : > { %298 = shalt.err (!%p295_p10)
}
  0x4c   : > { %197 = dma.vmem_to_hbm [thread:$0]  (%p493_p6), %s436_s11, 128, %s441_s18, %s111_s20  }
  0x4d PF: > { %p209_p12 = scmp.ge.s32.totalorder %s337_s9, 2  ;;  %s136_s30 = sand.u32 1, %s325_s6  }
  0x4e   : > { %p494_p2 = scmp.ne.s32.totalorder %s487_s17, 0  ;;  %s137_s2 = scalar_lea.sflag [#allocation4], %s136_s30 }
  0x50   : > { %p204_p3 = pnand %p209_p12, %p494_p2 }
  0x52   : > { %320 = dma.done.wait (!%p204_p3), %s137_s2, 128  }
  0x53   : > { %322 = vsyncadd (!%p204_p3), %s137_s2, 4294967168  ;;  %p12_p4 = scmp.ge.s32.totalorder %s376_s12, 4   ;;  %s495_s6 = smov %s329_s7 }
  0x54   : > { %s496_s7 = smov %s333_s8  ;;  %s497_s8 = smov %s387_s15 }
  0x55   : > { %s498_s9 = smov %s376_s12  ;;  %14 = sbr.rel (!%p12_p4) target bundleno = 4 (0x4), region = 61 }
  0x5c   :  { %142 = vsyncpa [#allocation3], 1 }
  0x5d   :  { %144 = vsyncpa [#allocation3 + $0x1], 1 }
  0x5e   :  { %145 = vsyncpa [#allocation4], 1 }
  0x5f   :  { %147 = vsyncpa [#allocation4 + $0x1], 1 }

// kernel: forward.1
= control target key start
LH: loop header
LB: loop body
LE: loop exit
PB: predicated region body
PF: predicated region fallthrough
CT: control target
= control target key end

     0   :  { %s2453_s17 = smov 0   ;;  %s2989_s0 = inlined_call_operand.vmem [shape: bf16[512,128], index: 0, kind: input, shape index: {}]   ;;  %s2990_s1 = inlined_call_operand.vmem [shape: bf16[128,256], index: 1, kind: input, shape index: {}]   ;;  %s2991_s2 = inlined_call_operand.vmem [shape: f32[1,256], index: 2, kind: input, shape index: {}]   ;;  %s2992_s3 = inlined_call_operand.vmem [shape: bf16[256,256], index: 3, kind: input, shape index: {}]   ;;  %s2993_s4 = inlined_call_operand.vmem [shape: f32[1,256], index: 4, kind: input, shape index: {}]   ;;  %s2994_s5 = inlined_call_operand.vmem [shape: bf16[256,128], index: 5, kind: input, shape index: {}]   ;;  %s2995_s6 = inlined_call_operand.vmem [shape: f32[1,128], index: 6, kind: input, shape index: {}]   ;;  %s2996_s7 = inlined_call_operand.vmem [shape: bf16[128,128], index: 7, kind: input, shape index: {}]   ;;  %s2997_s8 = inlined_call_operand.vmem [shape: f32[1,128], index: 8, kind: input, shape index: {}]   ;;  %s2998_s9 = inlined_call_operand.vmem [shape: bf16[128,128], index: 9, kind: input, shape index: {}]   ;;  %s2999_s10 = inlined_call_operand.vmem [shape: f32[1,128], index: 10, kind: input, shape index: {}]   ;;  %s3000_s11 = inlined_call_operand.vmem [shape: f32[512,128], index: 11, kind: output, shape index: {}]  }
   0x1 LB: > { %s1921_s18 = sadd.s32 4294967295, %s2390_s17   ;;  %p1925_p0 = scmp.ge.s32.totalorder %s2390_s17, 1  ;;  %s2390_s17 = sphi %s2453_s17, %s21_s17  }
   0x2   : > { %p338_p1 = scmp.lt.s32.totalorder %s2390_s17, 5 }
   0x4   : > { %p339_p2 = pnand %p1925_p0, %p338_p1 }
   0x5   : > { %v2208_v0 = vld [vmem:[%s2990_s1 + $0x4] ss:$8 sps:$4 sm:$0xff] (!%p339_p2)   ;;  %s1926_s21 = sshll.u32 (!%p339_p2), %s1921_s18, 4  ;;  %v2210_v1 = vld [vmem:[%s2990_s1] ss:$8 sps:$4 sm:$0xff] (!%p339_p2)   ;;  %v2392_v2 = vmov (!%p339_p2), 0  }
   0x6   : > { %342 = sbr.rel (%p339_p2) target bundleno = 1517 (0x5ed), region = 64  ;;  %595 = vmatprep.mubr.bf16.mxu0 (!%p339_p2), %v2392_v2  ;;  %p379_p3 = scmp.lt.s32.totalorder (!%p339_p2), %s1926_s21, 63  ;;  %563 = vmatprep.subr.bf16.mxu0 (!%p339_p2), %v2208_v0  ;;  %v2211_v3 = vld [vmem:[%s2990_s1 + $0x14] ss:$8 sps:$4 sm:$0xff] (!%p339_p2)   ;;  %v2213_v4 = vld [vmem:[%s2990_s1 + $0x10] ss:$8 sps:$4 sm:$0xff] (!%p339_p2)  }
   0x7   : > { %564 = vmatpush1.bf16.msra.mxu0 (!%p339_p2), %v2210_v1  ;;  %v2214_v5 = vld [vmem:[%s2990_s1 + $0x24] ss:$8 sps:$4 sm:$0xff] (!%p339_p2)   ;;  %v2216_v6 = vld [vmem:[%s2990_s1 + $0x20] ss:$8 sps:$4 sm:$0xff] (!%p339_p2)   ;;  %v2217_v7 = vld [vmem:[%s2990_s1 + $0x34] ss:$8 sps:$4 sm:$0xff] (!%p339_p2)  }
   0x8   : > { %565 = vmatprep.subr.bf16.mxu0 (!%p339_p2), %v2211_v3  ;;  %v2219_v8 = vld [vmem:[%s2990_s1 + $0x30] ss:$8 sps:$4 sm:$0xff] (!%p339_p2)   ;;  %v2220_v9 = vld [vmem:[%s2990_s1 + $0x44] ss:$8 sps:$4 sm:$0xff] (!%p339_p2)   ;;  %v2222_v10 = vld [vmem:[%s2990_s1 + $0x40] ss:$8 sps:$4 sm:$0xff] (!%p339_p2)  }
   0x9   : > { %v2223_v11 = vld [vmem:[%s2990_s1 + $0x54] ss:$8 sps:$4 sm:$0xff] (!%p339_p2)   ;;  %v2225_v12 = vld [vmem:[%s2990_s1 + $0x50] ss:$8 sps:$4 sm:$0xff] (!%p339_p2)   ;;  %v2226_v13 = vld [vmem:[%s2990_s1 + $0x64] ss:$8 sps:$4 sm:$0xff] (!%p339_p2)  }
   0xa   : > { %v2240_v14 = vld [vmem:[%s2992_s3 + $0x4] ss:$8 sps:$4 sm:$0xff] (!%p339_p2)   ;;  %v2242_v15 = vld [vmem:[%s2992_s3] ss:$8 sps:$4 sm:$0xff] (!%p339_p2)   ;;  %v2243_v16 = vld [vmem:[%s2992_s3 + $0x14] ss:$8 sps:$4 sm:$0xff] (!%p339_p2)  }
   0xb   : > { %566 = vmatpush1.bf16.msra.mxu0 (!%p339_p2), %v2213_v4  ;;  %928 = vmatprep.subr.bf16.mxu1 (!%p339_p2), %v2240_v14  ;;  %v2245_v17 = vld [vmem:[%s2992_s3 + $0x10] ss:$8 sps:$4 sm:$0xff] (!%p339_p2)   ;;  %v2228_v18 = vld [vmem:[%s2990_s1 + $0x60] ss:$8 sps:$4 sm:$0xff] (!%p339_p2)   ;;  %v2246_v19 = vld [vmem:[%s2992_s3 + $0x24] ss:$8 sps:$4 sm:$0xff] (!%p339_p2)  }
   0xc   : > { %567 = vmatprep.subr.bf16.mxu0 (!%p339_p2), %v2214_v5  ;;  %929 = vmatpush1.bf16.msra.mxu1 (!%p339_p2), %v2242_v15  ;;  %v2229_v20 = vld [vmem:[%s2990_s1 + $0x74] ss:$8 sps:$4 sm:$0xff] (!%p339_p2)   ;;  %v2248_v21 = vld [vmem:[%s2992_s3 + $0x20] ss:$8 sps:$4 sm:$0xff] (!%p339_p2)   ;;  %v2231_v22 = vld [vmem:[%s2990_s1 + $0x70] ss:$8 sps:$4 sm:$0xff] (!%p339_p2)  }
   0xd   : > { %s3002_s21 = smov (!%p379_p3, %s1926_s21), 63  ;;  %930 = vmatprep.subr.bf16.mxu1 %v2243_v16  ;;  %v2249_v23 = vld [vmem:[%s2992_s3 + $0x34] ss:$8 sps:$4 sm:$0xff]   ;;  %v2251_v25 = vld [vmem:[%s2992_s3 + $0x30] ss:$8 sps:$4 sm:$0xff]   ;;  %v2288_v57 = vld [vmem:[%s2994_s5 + $0x40] sm:$0xff]  }
   0xe   : > { %s1927_s30 = sshll.u32 %s3002_s21, 2  ;;  %v2252_v26 = vld [vmem:[%s2992_s3 + $0x44] ss:$8 sps:$4 sm:$0xff]   ;;  %v2254_v27 = vld [vmem:[%s2992_s3 + $0x40] ss:$8 sps:$4 sm:$0xff]   ;;  %v2292_v61 = vld [vmem:[%s2994_s5 + $0x50] sm:$0xff]  }
   0xf   : > { %s2489_s19 = scalar_lea.vmem %s2989_s0, %s1927_s30  ;;  %568 = vmatpush1.bf16.msra.mxu0 %v2216_v6  ;;  %v2255_v28 = vld [vmem:[%s2992_s3 + $0x54] ss:$8 sps:$4 sm:$0xff]   ;;  %v2257_v30 = vld [vmem:[%s2992_s3 + $0x50] ss:$8 sps:$4 sm:$0xff]   ;;  %v2258_v31 = vld [vmem:[%s2992_s3 + $0x64] ss:$8 sps:$4 sm:$0xff]  }
  0x10   : > { %569 = vmatprep.subr.bf16.mxu0 %v2217_v7  ;;  %931 = vmatpush1.bf16.msra.mxu1 %v2245_v17  ;;  %v2232_v24 = vld [vmem:[%s2489_s19] sm:$0xff]   ;;  %v2233_v29 = vld [vmem:[%s2489_s19 + $0x8] sm:$0xff]   ;;  %v2261_v33 = vld [vmem:[%s2992_s3 + $0x74] ss:$8 sps:$4 sm:$0xff]   ;;  %v425_v7 = vlaneseq  ;;  %s1929_s28 = sshll.u32 %s3002_s21, 3 }
  0x11   : > { %932 = vmatprep.subr.bf16.mxu1 %v2246_v19  ;;  %v2260_v32 = vld [vmem:[%s2992_s3 + $0x60] ss:$8 sps:$4 sm:$0xff]   ;;  %v2234_v34 = vld [vmem:[%s2489_s19 + $0x10] sm:$0xff]   ;;  %v2264_v36 = vld [vmem:[%s2992_s3 + $0x84] ss:$8 sps:$4 sm:$0xff]   ;;  %s2952_s12 = scalar_lea.vmem %s3000_s11, %s1929_s28 }
  0x12   : > { %v2263_v35 = vld [vmem:[%s2992_s3 + $0x70] ss:$8 sps:$4 sm:$0xff]   ;;  %v2266_v37 = vld [vmem:[%s2992_s3 + $0x80] ss:$8 sps:$4 sm:$0xff]   ;;  %v2267_v38 = vld [vmem:[%s2992_s3 + $0x94] ss:$8 sps:$4 sm:$0xff]  }
  0x13   : > { %570 = vmatpush1.bf16.msra.mxu0 %v2219_v8  ;;  %v2235_v39 = vld [vmem:[%s2489_s19 + $0x18] sm:$0xff]   ;;  %v2270_v41 = vld [vmem:[%s2992_s3 + $0xa4] ss:$8 sps:$4 sm:$0xff]   ;;  %v2272_v42 = vld [vmem:[%s2992_s3 + $0xa0] ss:$8 sps:$4 sm:$0xff]   ;;  %v2671_v8 = vshrl.u32 %v425_v7, 7 }
  0x14   : > { %571 = vmatprep.subr.bf16.mxu0 %v2220_v9  ;;  %933 = vmatpush1.bf16.msra.mxu1 %v2248_v21  ;;  %v2269_v40 = vld [vmem:[%s2992_s3 + $0x90] ss:$8 sps:$4 sm:$0xff]   ;;  %v2273_v43 = vld [vmem:[%s2992_s3 + $0xb4] ss:$8 sps:$4 sm:$0xff]   ;;  %v2236_v44 = vld [vmem:[%s2489_s19 + $0x20] sm:$0xff]  }
  0x15   : > { %934 = vmatprep.subr.bf16.mxu1 %v2249_v23  ;;  %v2275_v45 = vld [vmem:[%s2992_s3 + $0xb0] ss:$8 sps:$4 sm:$0xff]   ;;  %v2276_v46 = vld [vmem:[%s2992_s3 + $0xc4] ss:$8 sps:$4 sm:$0xff]   ;;  %v2278_v47 = vld [vmem:[%s2992_s3 + $0xc0] ss:$8 sps:$4 sm:$0xff]  }
  0x16   : > { %v2279_v48 = vld [vmem:[%s2992_s3 + $0xd4] ss:$8 sps:$4 sm:$0xff]   ;;  %v2237_v49 = vld [vmem:[%s2489_s19 + $0x28] sm:$0xff]   ;;  %v2281_v52 = vld [vmem:[%s2992_s3 + $0xd0] ss:$8 sps:$4 sm:$0xff]   ;;  %v427_v9 = vsub.s32 0, %v2671_v8 }
  0x17   : > { %572 = vmatpush1.bf16.msra.mxu0 %v2222_v10  ;;  %v2238_v50 = vld [vmem:[%s2489_s19 + $0x30] sm:$0xff]   ;;  %v2239_v51 = vld [vmem:[%s2489_s19 + $0x38] sm:$0xff]   ;;  %v2282_v53 = vld [vmem:[%s2992_s3 + $0xe4] ss:$8 sps:$4 sm:$0xff]  }
  0x18   : > { %573 = vmatprep.subr.bf16.mxu0 %v2223_v11  ;;  %935 = vmatpush1.bf16.msra.mxu1 %v2251_v25  ;;  %v2284_v54 = vld [vmem:[%s2992_s3 + $0xe0] ss:$8 sps:$4 sm:$0xff]   ;;  %v2285_v55 = vld [vmem:[%s2992_s3 + $0xf4] ss:$8 sps:$4 sm:$0xff]   ;;  %v2287_v56 = vld [vmem:[%s2992_s3 + $0xf0] ss:$8 sps:$4 sm:$0xff]  }
  0x19   : > { %936 = vmatprep.subr.bf16.mxu1 %v2252_v26  ;;  %v2289_v58 = vld [vmem:[%s2994_s5] sm:$0xff]   ;;  %v2290_v59 = vld [vmem:[%s2994_s5 + $0x48] sm:$0xff]   ;;  %v2293_v62 = vld [vmem:[%s2994_s5 + $0x10] sm:$0xff]   ;;  %v431_v11 = vsub.s32 1, %v2671_v8 }
  0x1a   : > { %v2291_v60 = vld [vmem:[%s2994_s5 + $0x8] sm:$0xff]   ;;  %v2294_v63 = vld [vmem:[%s2994_s5 + $0x58] sm:$0xff]   ;;  %v2296_v1 = vld [vmem:[%s2994_s5 + $0x60] sm:$0xff]  }
  0x1b   : > { %574 = vmatpush1.bf16.msra.mxu0 %v2225_v12  ;;  %v2295_v0 = vld [vmem:[%s2994_s5 + $0x18] sm:$0xff]   ;;  %v2298_v3 = vld [vmem:[%s2994_s5 + $0x68] sm:$0xff]   ;;  %v2300_v5 = vld [vmem:[%s2994_s5 + $0x70] sm:$0xff]  }
  0x1c   : > { %575 = vmatprep.subr.bf16.mxu0 %v2226_v13  ;;  %937 = vmatpush1.bf16.msra.mxu1 %v2254_v27  ;;  %v2299_v4 = vld [vmem:[%s2994_s5 + $0x28] sm:$0xff]   ;;  %v2301_v6 = vld [vmem:[%s2994_s5 + $0x30] sm:$0xff]   ;;  %v423_v10 = vld [vmem:[%s2991_s2] sm:$0x3] }
  0x1d   : > { %938 = vmatprep.subr.bf16.mxu1 %v2255_v28  ;;  %v2680_v12 = vrot.slane %v423_v10, %v427_v9  ;;  %v2684_v13 = vrot.slane %v423_v10, %v431_v11 }
  0x1f   : > { %576 = vmatpush1.bf16.msra.mxu0 %v2228_v18 }
  0x20   : > { %577 = vmatprep.subr.bf16.mxu0 %v2229_v20  ;;  %939 = vmatpush1.bf16.msra.mxu1 %v2257_v30 }
  0x21   : > { %940 = vmatprep.subr.bf16.mxu1 %v2258_v31 }
  0x23   : > { %578 = vmatpush1.bf16.msra.mxu0 %v2231_v22 }
  0x24   : > { %941 = vmatpush1.bf16.msra.mxu1 %v2260_v32  ;;  %2023 = vmatprep.subr.bf16.mxu0 %v2288_v57 }
  0x25   : > { %942 = vmatprep.subr.bf16.mxu1 %v2261_v33 }
  0x26   : > { %596 = vmatmul.mubr.bf16.vlgmr.msra.gmra.mrb[0].mxu0 %v2232_v24 }
  0x27   : > { %605 = vmatprep.mubr.bf16.mxu0 %v2392_v2  ;;  %2024 = vmatpush3.bf16.msra.mxu0 %v2289_v58 }
  0x28   : > { %943 = vmatpush1.bf16.msra.mxu1 %v2263_v35  ;;  %2025 = vmatprep.subr.bf16.mxu0 %v2290_v59 }
  0x29   : > { %944 = vmatprep.subr.bf16.mxu1 %v2264_v36 }
  0x2b   : > { %2026 = vmatpush3.bf16.msra.mxu0 %v2291_v60 }
  0x2c   : > { %945 = vmatpush1.bf16.msra.mxu1 %v2266_v37  ;;  %2027 = vmatprep.subr.bf16.mxu0 %v2292_v61 }
  0x2d   : > { %946 = vmatprep.subr.bf16.mxu1 %v2267_v38 }
  0x2e   : > { %606 = vmatmul.mubr.bf16.gmra.mrb[4].mxu0 %v2233_v29 }
  0x2f   : > { %615 = vmatprep.mubr.bf16.mxu0 %v2392_v2  ;;  %2028 = vmatpush3.bf16.msra.mxu0 %v2293_v62 }
  0x30   : > { %947 = vmatpush1.bf16.msra.mxu1 %v2269_v40  ;;  %2029 = vmatprep.subr.bf16.mxu0 %v2294_v63 }
  0x31   : > { %948 = vmatprep.subr.bf16.mxu1 %v2270_v41 }
  0x33   : > { %2030 = vmatpush3.bf16.msra.mxu0 %v2295_v0 }
  0x34   : > { %949 = vmatpush1.bf16.msra.mxu1 %v2272_v42  ;;  %2031 = vmatprep.subr.bf16.mxu0 %v2296_v1 }
  0x35   : > { %950 = vmatprep.subr.bf16.mxu1 %v2273_v43 }
  0x36   : > { %616 = vmatmul.mubr.bf16.gmra.mrb[8].mxu0 %v2234_v34 }
  0x37   : > { %625 = vmatprep.mubr.bf16.mxu0 %v2392_v2 }
  0x38   : > { %951 = vmatpush1.bf16.msra.mxu1 %v2275_v45 }
  0x39   : > { %952 = vmatprep.subr.bf16.mxu1 %v2276_v46 }
  0x3c   : > { %953 = vmatpush1.bf16.msra.mxu1 %v2278_v47 }
  0x3d   : > { %954 = vmatprep.subr.bf16.mxu1 %v2279_v48 }
  0x3e   : > { %626 = vmatmul.mubr.bf16.gmra.mrb[12].mxu0 %v2235_v39 }
  0x3f   : > { %635 = vmatprep.mubr.bf16.mxu0 %v2392_v2 }
  0x40   : > { %955 = vmatpush1.bf16.msra.mxu1 %v2281_v52 }
  0x41   : > { %956 = vmatprep.subr.bf16.mxu1 %v2282_v53 }
  0x44   : > { %957 = vmatpush1.bf16.msra.mxu1 %v2284_v54 }
  0x45   : > { %958 = vmatprep.subr.bf16.mxu1 %v2285_v55 }
  0x46   : > { %636 = vmatmul.mubr.bf16.gmra.mrb[16].mxu0 %v2236_v44 }
  0x47   : > { %645 = vmatprep.mubr.bf16.mxu0 %v2392_v2 }
  0x48   : > { %959 = vmatpush1.bf16.msra.mxu1 %v2287_v56 }
  0x4e   : > { %646 = vmatmul.mubr.bf16.gmra.mrb[20].mxu0 %v2237_v49 }
  0x4f   : > { %655 = vmatprep.mubr.bf16.mxu0 %v2392_v2 }
  0x56   : > { %656 = vmatmul.mubr.bf16.gmra.mrb[24].mxu0 %v2238_v50 }
  0x57   : > { %665 = vmatprep.mubr.bf16.mxu0 %v2392_v2  ;;  %v2297_v2 = vld [vmem:[%s2994_s5 + $0x20] sm:$0xff]  }
  0x58   : > { %2032 = vmatpush3.bf16.msra.mxu0 %v2297_v2 }
  0x59   : > { %2033 = vmatprep.subr.bf16.mxu0 %v2298_v3 }
  0x5c   : > { %2034 = vmatpush3.bf16.msra.mxu0 %v2299_v4 }
  0x5d   : > { %2035 = vmatprep.subr.bf16.mxu0 %v2300_v5 }
  0x5e   : > { %666 = vmatmul.mubr.bf16.gmra.mrb[28].mxu0 %v2239_v51 }
  0x60   : > { %2036 = vmatpush3.bf16.msra.mxu0 %v2301_v6 }
  0xf9   : > { %v597_v14 = vpop.f32.mrb[0].mxu0 }
  0xfa   : > { %v598_v15 = vadd.f32 %v597_v14, %v2680_v12  ;;  %v599_v16 = vpop.f32.mrb[1].mxu0 }
  0xfb   : > { %v600_v17 = vadd.f32 %v599_v16, %v2684_v13  ;;  %v601_v18 = vpop.f32.mrb[2].mxu0 }
  0xfc   : > { %v602_v19 = vadd.f32 %v601_v18, %v2680_v12  ;;  %v603_v20 = vpop.f32.mrb[3].mxu0  ;;  %v676_v22 = vmax.f32 %v598_v15, 0.0 }
  0xfd   : > { %v604_v21 = vadd.f32 %v603_v20, %v2684_v13  ;;  %v677_v24 = vmax.f32 %v600_v17, 0.0 }
  0xfe   : > { %v678_v23 = vmax.f32 %v602_v19, 0.0 }
  0xff   : > { %v679_v25 = vmax.f32 %v604_v21, 0.0 }
 0x100   : > { %v708_v26 = vpack.c.bf16 %v678_v23, %v676_v22 }
 0x101   : > { %v607_v27 = vpop.f32.mrb[4].mxu0  ;;  %v709_v28 = vpack.c.bf16 %v679_v25, %v677_v24 }
 0x102   : > { %v608_v29 = vadd.f32 %v607_v27, %v2680_v12  ;;  %v609_v30 = vpop.f32.mrb[5].mxu0 }
 0x103   : > { %v610_v31 = vadd.f32 %v609_v30, %v2684_v13  ;;  %v611_v32 = vpop.f32.mrb[6].mxu0  ;;  %960 = vmatprep.mubr.bf16.mxu1 %v709_v28 }
 0x104   : > { %v612_v33 = vadd.f32 %v611_v32, %v2680_v12  ;;  %v613_v34 = vpop.f32.mrb[7].mxu0  ;;  %961 = vmatmul.mubr.bf16.vlgmr.msra.gmra.mrb[0].mxu1 %v708_v26  ;;  %v680_v36 = vmax.f32 %v608_v29, 0.0 }
 0x105   : > { %v614_v35 = vadd.f32 %v613_v34, %v2684_v13  ;;  %v681_v38 = vmax.f32 %v610_v31, 0.0 }
 0x106   : > { %v682_v37 = vmax.f32 %v612_v33, 0.0 }
 0x107   : > { %v683_v39 = vmax.f32 %v614_v35, 0.0 }
 0x108   : > { %v710_v40 = vpack.c.bf16 %v682_v37, %v680_v36 }
 0x109   : > { %v711_v41 = vpack.c.bf16 %v683_v39, %v681_v38  ;;  %v617_v42 = vpop.f32.mrb[8].mxu0 }
 0x10a   : > { %v618_v43 = vadd.f32 %v617_v42, %v2680_v12  ;;  %v619_v44 = vpop.f32.mrb[9].mxu0 }
 0x10b   : > { %v620_v45 = vadd.f32 %v619_v44, %v2684_v13  ;;  %v621_v46 = vpop.f32.mrb[10].mxu0  ;;  %970 = vmatprep.mubr.bf16.mxu1 %v711_v41 }
 0x10c   : > { %v622_v47 = vadd.f32 %v621_v46, %v2680_v12  ;;  %v623_v48 = vpop.f32.mrb[11].mxu0  ;;  %971 = vmatmul.mubr.bf16.gmra.mrb[4].mxu1 %v710_v40  ;;  %v684_v50 = vmax.f32 %v618_v43, 0.0 }
 0x10d   : > { %v624_v49 = vadd.f32 %v623_v48, %v2684_v13  ;;  %v685_v52 = vmax.f32 %v620_v45, 0.0 }
 0x10e   : > { %v686_v51 = vmax.f32 %v622_v47, 0.0 }
 0x10f   : > { %v687_v53 = vmax.f32 %v624_v49, 0.0 }
 0x110   : > { %v712_v54 = vpack.c.bf16 %v686_v51, %v684_v50 }
 0x111   : > { %v713_v55 = vpack.c.bf16 %v687_v53, %v685_v52  ;;  %v627_v56 = vpop.f32.mrb[12].mxu0 }
 0x112   : > { %v628_v57 = vadd.f32 %v627_v56, %v2680_v12  ;;  %v629_v58 = vpop.f32.mrb[13].mxu0 }
 0x113   : > { %v630_v59 = vadd.f32 %v629_v58, %v2684_v13  ;;  %v631_v60 = vpop.f32.mrb[14].mxu0  ;;  %980 = vmatprep.mubr.bf16.mxu1 %v713_v55 }
 0x114   : > { %v632_v61 = vadd.f32 %v631_v60, %v2680_v12  ;;  %v633_v62 = vpop.f32.mrb[15].mxu0  ;;  %981 = vmatmul.mubr.bf16.gmra.mrb[8].mxu1 %v712_v54  ;;  %v688_v0 = vmax.f32 %v628_v57, 0.0 }
 0x115   : > { %v634_v63 = vadd.f32 %v633_v62, %v2684_v13  ;;  %v689_v2 = vmax.f32 %v630_v59, 0.0 }
 0x116   : > { %v690_v1 = vmax.f32 %v632_v61, 0.0 }
 0x117   : > { %v691_v3 = vmax.f32 %v634_v63, 0.0 }
 0x118   : > { %v714_v4 = vpack.c.bf16 %v690_v1, %v688_v0 }
 0x119   : > { %v715_v5 = vpack.c.bf16 %v691_v3, %v689_v2  ;;  %v637_v6 = vpop.f32.mrb[16].mxu0  ;;  %v2302_v3 = vld [vmem:[%s2994_s5 + $0x78] sm:$0xff]  }
 0x11a   : > { %v638_v7 = vadd.f32 %v637_v6, %v2680_v12  ;;  %v639_v10 = vpop.f32.mrb[17].mxu0  ;;  %2037 = vmatprep.subr.bf16.mxu0 %v2302_v3  ;;  %v756_v6 = vld [vmem:[%s2993_s4] sm:$0x3] }
 0x11b   : > { %v640_v14 = vadd.f32 %v639_v10, %v2684_v13  ;;  %v641_v15 = vpop.f32.mrb[18].mxu0  ;;  %990 = vmatprep.mubr.bf16.mxu1 %v715_v5  ;;  %v2306_v5 = vld [vmem:[%s2996_s7 + $0x10] sm:$0xff]   ;;  %v2742_v10 = vrot.slane %v756_v6, %v431_v11 }
 0x11c   : > { %v642_v16 = vadd.f32 %v641_v15, %v2680_v12  ;;  %v643_v17 = vpop.f32.mrb[19].mxu0  ;;  %991 = vmatmul.mubr.bf16.gmra.mrb[12].mxu1 %v714_v4  ;;  %v692_v19 = vmax.f32 %v638_v7, 0.0  ;;  %v2305_v4 = vld [vmem:[%s2996_s7 + $0x8] sm:$0xff]   ;;  %v2738_v7 = vrot.slane %v756_v6, %v427_v9 }
 0x11d   : > { %v644_v18 = vadd.f32 %v643_v17, %v2684_v13  ;;  %v693_v21 = vmax.f32 %v640_v14, 0.0 }
 0x11e   : > { %v694_v20 = vmax.f32 %v642_v16, 0.0 }
 0x11f   : > { %v695_v22 = vmax.f32 %v644_v18, 0.0 }
 0x120   : > { %v716_v23 = vpack.c.bf16 %v694_v20, %v692_v19 }
 0x121   : > { %v717_v24 = vpack.c.bf16 %v695_v22, %v693_v21  ;;  %v647_v25 = vpop.f32.mrb[20].mxu0 }
 0x122   : > { %v648_v26 = vadd.f32 %v647_v25, %v2680_v12  ;;  %v649_v27 = vpop.f32.mrb[21].mxu0 }
 0x123   : > { %v650_v28 = vadd.f32 %v649_v27, %v2684_v13  ;;  %v651_v29 = vpop.f32.mrb[22].mxu0  ;;  %1000 = vmatprep.mubr.bf16.mxu1 %v717_v24 }
 0x124   : > { %v652_v30 = vadd.f32 %v651_v29, %v2680_v12  ;;  %v653_v31 = vpop.f32.mrb[23].mxu0  ;;  %1001 = vmatmul.mubr.bf16.gmra.mrb[16].mxu1 %v716_v23  ;;  %v696_v33 = vmax.f32 %v648_v26, 0.0 }
 0x125   : > { %v654_v32 = vadd.f32 %v653_v31, %v2684_v13  ;;  %v697_v35 = vmax.f32 %v650_v28, 0.0 }
 0x126   : > { %v698_v34 = vmax.f32 %v652_v30, 0.0 }
 0x127   : > { %v699_v36 = vmax.f32 %v654_v32, 0.0 }
 0x128   : > { %v718_v37 = vpack.c.bf16 %v698_v34, %v696_v33 }
 0x129   : > { %v719_v38 = vpack.c.bf16 %v699_v36, %v697_v35  ;;  %v657_v39 = vpop.f32.mrb[24].mxu0 }
 0x12a   : > { %v658_v40 = vadd.f32 %v657_v39, %v2680_v12  ;;  %v659_v41 = vpop.f32.mrb[25].mxu0 }
 0x12b   : > { %v660_v42 = vadd.f32 %v659_v41, %v2684_v13  ;;  %v661_v43 = vpop.f32.mrb[26].mxu0  ;;  %1010 = vmatprep.mubr.bf16.mxu1 %v719_v38 }
 0x12c   : > { %v662_v44 = vadd.f32 %v661_v43, %v2680_v12  ;;  %v663_v45 = vpop.f32.mrb[27].mxu0  ;;  %1011 = vmatmul.mubr.bf16.gmra.mrb[20].mxu1 %v718_v37  ;;  %v700_v47 = vmax.f32 %v658_v40, 0.0 }
 0x12d   : > { %v664_v46 = vadd.f32 %v663_v45, %v2684_v13  ;;  %v701_v49 = vmax.f32 %v660_v42, 0.0 }
 0x12e   : > { %v702_v48 = vmax.f32 %v662_v44, 0.0 }
 0x12f   : > { %v703_v50 = vmax.f32 %v664_v46, 0.0 }
 0x130   : > { %v720_v51 = vpack.c.bf16 %v702_v48, %v700_v47 }
 0x131   : > { %v721_v52 = vpack.c.bf16 %v703_v50, %v701_v49  ;;  %v667_v53 = vpop.f32.mrb[28].mxu0 }
 0x132   : > { %v668_v54 = vadd.f32 %v667_v53, %v2680_v12  ;;  %v669_v55 = vpop.f32.mrb[29].mxu0 }
 0x133   : > { %v670_v56 = vadd.f32 %v669_v55, %v2684_v13  ;;  %v671_v57 = vpop.f32.mrb[30].mxu0  ;;  %1020 = vmatprep.mubr.bf16.mxu1 %v721_v52 }
 0x134   : > { %v672_v58 = vadd.f32 %v671_v57, %v2680_v12  ;;  %v673_v59 = vpop.f32.mrb[31].mxu0  ;;  %1021 = vmatmul.mubr.bf16.gmra.mrb[24].mxu1 %v720_v51  ;;  %v704_v61 = vmax.f32 %v668_v54, 0.0  ;;  %v2303_v12 = vld [vmem:[%s2994_s5 + $0x38] sm:$0xff]  }
 0x135   : > { %v674_v60 = vadd.f32 %v673_v59, %v2684_v13  ;;  %v705_v63 = vmax.f32 %v670_v56, 0.0  ;;  %2038 = vmatpush3.bf16.msra.mxu0 %v2303_v12  ;;  %v2304_v13 = vld [vmem:[%s2996_s7] sm:$0xff]  }
 0x136   : > { %v706_v62 = vmax.f32 %v672_v58, 0.0  ;;  %2119 = vmatprep.subr.bf16.mxu1 %v2304_v13 }
 0x137   : > { %v707_v0 = vmax.f32 %v674_v60, 0.0  ;;  %2120 = vmatpush3.bf16.msra.mxu1 %v2304_v13 }
 0x138   : > { %v722_v1 = vpack.c.bf16 %v706_v62, %v704_v61  ;;  %2121 = vmatprep.subr.bf16.mxu1 %v2305_v4 }
 0x139   : > { %v723_v2 = vpack.c.bf16 %v707_v0, %v705_v63 }
 0x13b   : > { %1030 = vmatprep.mubr.bf16.mxu1 %v723_v2  ;;  %2122 = vmatpush3.bf16.msra.mxu1 %v2305_v4 }
 0x13c   : > { %1031 = vmatmul.mubr.bf16.gmra.mrb[28].mxu1 %v722_v1  ;;  %2123 = vmatprep.subr.bf16.mxu1 %v2306_v5 }
 0x13f   : > { %2124 = vmatpush3.bf16.msra.mxu1 %v2306_v5 }
 0x1d7   : > { %v962_v14 = vpop.f32.mrb[0].mxu1 }
 0x1d8   : > { %v963_v15 = vadd.f32 %v962_v14, %v2738_v7  ;;  %v964_v16 = vpop.f32.mrb[1].mxu1 }
 0x1d9   : > { %v965_v17 = vadd.f32 %v964_v16, %v2742_v10  ;;  %v966_v18 = vpop.f32.mrb[2].mxu1 }
 0x1da   : > { %v967_v19 = vadd.f32 %v966_v18, %v2738_v7  ;;  %v968_v20 = vpop.f32.mrb[3].mxu1  ;;  %v1041_v22 = vmax.f32 %v963_v15, 0.0 }
 0x1db   : > { %v969_v21 = vadd.f32 %v968_v20, %v2742_v10  ;;  %v1042_v9 = vmax.f32 %v965_v17, 0.0 }
 0x1dc   : > { %v1043_v23 = vmax.f32 %v967_v19, 0.0 }
 0x1dd   : > { %v1044_v24 = vmax.f32 %v969_v21, 0.0 }
 0x1de   : > { %v1073_v25 = vpack.c.bf16 %v1043_v23, %v1041_v22 }
 0x1df   : > { %v1074_v8 = vpack.c.bf16 %v1044_v24, %v1042_v9  ;;  %v972_v11 = vpop.f32.mrb[4].mxu1 }
 0x1e0   : > { %v973_v26 = vadd.f32 %v972_v11, %v2738_v7  ;;  %v974_v27 = vpop.f32.mrb[5].mxu1 }
 0x1e1   : > { %v975_v28 = vadd.f32 %v974_v27, %v2742_v10  ;;  %v976_v29 = vpop.f32.mrb[6].mxu1  ;;  %1256 = vmatprep.mubr.bf16.mxu0 %v1074_v8 }
 0x1e2   : > { %v977_v30 = vadd.f32 %v976_v29, %v2738_v7  ;;  %v978_v31 = vpop.f32.mrb[7].mxu1  ;;  %1257 = vmatmul.mubr.bf16.vlgmr.msra.gmra.mrb[32].mxu0 %v1073_v25  ;;  %v1045_v33 = vmax.f32 %v973_v26, 0.0 }
 0x1e3   : > { %v979_v32 = vadd.f32 %v978_v31, %v2742_v10  ;;  %v1046_v35 = vmax.f32 %v975_v28, 0.0 }
 0x1e4   : > { %v1047_v34 = vmax.f32 %v977_v30, 0.0 }
 0x1e5   : > { %v1048_v36 = vmax.f32 %v979_v32, 0.0 }
 0x1e6   : > { %v1075_v37 = vpack.c.bf16 %v1047_v34, %v1045_v33 }
 0x1e7   : > { %v1076_v38 = vpack.c.bf16 %v1048_v36, %v1046_v35  ;;  %v982_v39 = vpop.f32.mrb[8].mxu1 }
 0x1e8   : > { %v983_v40 = vadd.f32 %v982_v39, %v2738_v7  ;;  %v984_v41 = vpop.f32.mrb[9].mxu1 }
 0x1e9   : > { %v985_v42 = vadd.f32 %v984_v41, %v2742_v10  ;;  %v986_v43 = vpop.f32.mrb[10].mxu1  ;;  %1264 = vmatprep.mubr.bf16.mxu0 %v1076_v38 }
 0x1ea   : > { %v987_v44 = vadd.f32 %v986_v43, %v2738_v7  ;;  %v988_v45 = vpop.f32.mrb[11].mxu1  ;;  %1265 = vmatmul.mubr.bf16.gmra.mrb[36].mxu0 %v1075_v37  ;;  %v1049_v47 = vmax.f32 %v983_v40, 0.0 }
 0x1eb   : > { %v989_v46 = vadd.f32 %v988_v45, %v2742_v10  ;;  %v1050_v49 = vmax.f32 %v985_v42, 0.0 }
 0x1ec   : > { %v1051_v48 = vmax.f32 %v987_v44, 0.0 }
 0x1ed   : > { %v1052_v50 = vmax.f32 %v989_v46, 0.0 }
 0x1ee   : > { %v1077_v51 = vpack.c.bf16 %v1051_v48, %v1049_v47 }
 0x1ef   : > { %v1078_v52 = vpack.c.bf16 %v1052_v50, %v1050_v49  ;;  %v992_v53 = vpop.f32.mrb[12].mxu1 }
 0x1f0   : > { %v993_v54 = vadd.f32 %v992_v53, %v2738_v7  ;;  %v994_v55 = vpop.f32.mrb[13].mxu1 }
 0x1f1   : > { %v995_v56 = vadd.f32 %v994_v55, %v2742_v10  ;;  %v996_v57 = vpop.f32.mrb[14].mxu1  ;;  %1272 = vmatprep.mubr.bf16.mxu0 %v1078_v52 }
 0x1f2   : > { %v997_v58 = vadd.f32 %v996_v57, %v2738_v7  ;;  %v998_v59 = vpop.f32.mrb[15].mxu1  ;;  %1273 = vmatmul.mubr.bf16.gmra.mrb[40].mxu0 %v1077_v51  ;;  %v1053_v61 = vmax.f32 %v993_v54, 0.0 }
 0x1f3   : > { %v999_v60 = vadd.f32 %v998_v59, %v2742_v10  ;;  %v1054_v63 = vmax.f32 %v995_v56, 0.0 }
 0x1f4   : > { %v1055_v62 = vmax.f32 %v997_v58, 0.0 }
 0x1f5   : > { %v1056_v0 = vmax.f32 %v999_v60, 0.0 }
 0x1f6   : > { %v1079_v1 = vpack.c.bf16 %v1055_v62, %v1053_v61  ;;  %v2307_v61 = vld [vmem:[%s2996_s7 + $0x18] sm:$0xff]   ;;  %v2310_v62 = vld [vmem:[%s2996_s7 + $0x30] sm:$0xff]  }
 0x1f7   : > { %v1080_v2 = vpack.c.bf16 %v1056_v0, %v1054_v63  ;;  %v1002_v3 = vpop.f32.mrb[16].mxu1  ;;  %2125 = vmatprep.subr.bf16.mxu1 %v2307_v61  ;;  %v2311_v63 = vld [vmem:[%s2996_s7 + $0x38] sm:$0xff]   ;;  %v2312_v0 = vld [vmem:[%s2998_s9] sm:$0xff]  }
 0x1f8   : > { %v1003_v12 = vadd.f32 %v1002_v3, %v2738_v7  ;;  %v1004_v13 = vpop.f32.mrb[17].mxu1  ;;  %2126 = vmatpush3.bf16.msra.mxu1 %v2307_v61  ;;  %2151 = vmatprep.subr.bf16.mxu0 %v2312_v0  ;;  %v2803_v3 = vld [vmem:[%s2998_s9 + $0x18] sm:$0xff]  }
 0x1f9   : > { %v1005_v4 = vadd.f32 %v1004_v13, %v2742_v10  ;;  %v1006_v5 = vpop.f32.mrb[18].mxu1  ;;  %1280 = vmatprep.mubr.bf16.mxu0 %v1080_v2  ;;  %2152 = vmatpush3.bf16.msra.mxu0 %v2312_v0  ;;  %v2314_v2 = vld [vmem:[%s2998_s9 + $0x10] sm:$0xff]   ;;  %v2816_v13 = vld [vmem:[%s2998_s9 + $0x28] sm:$0xff]  }
 0x1fa   : > { %v1007_v6 = vadd.f32 %v1006_v5, %v2738_v7  ;;  %v1008_v14 = vpop.f32.mrb[19].mxu1  ;;  %1281 = vmatmul.mubr.bf16.gmra.mrb[44].mxu0 %v1079_v1  ;;  %v1057_v16 = vmax.f32 %v1003_v12, 0.0  ;;  %v2313_v1 = vld [vmem:[%s2998_s9 + $0x8] sm:$0xff]   ;;  %v2809_v12 = vld [vmem:[%s2998_s9 + $0x20] sm:$0xff]  }
 0x1fb   : > { %v1009_v15 = vadd.f32 %v1008_v14, %v2742_v10  ;;  %v1058_v18 = vmax.f32 %v1005_v4, 0.0  ;;  %2153 = vmatprep.subr.bf16.mxu0 %v2313_v1  ;;  %v2824_v5 = vld [vmem:[%s2995_s6] ss:$0 sm:$0xff] }
 0x1fc   : > { %v1059_v17 = vmax.f32 %v1007_v6, 0.0 }
 0x1fd   : > { %v1060_v19 = vmax.f32 %v1009_v15, 0.0  ;;  %2154 = vmatpush3.bf16.msra.mxu0 %v2313_v1 }
 0x1fe   : > { %v1081_v20 = vpack.c.bf16 %v1059_v17, %v1057_v16  ;;  %2155 = vmatprep.subr.bf16.mxu0 %v2314_v2 }
 0x1ff   : > { %v1082_v21 = vpack.c.bf16 %v1060_v19, %v1058_v18  ;;  %v1012_v22 = vpop.f32.mrb[20].mxu1 }
 0x200   : > { %v1013_v23 = vadd.f32 %v1012_v22, %v2738_v7  ;;  %v1014_v9 = vpop.f32.mrb[21].mxu1 }
 0x201   : > { %v1015_v24 = vadd.f32 %v1014_v9, %v2742_v10  ;;  %v1016_v25 = vpop.f32.mrb[22].mxu1  ;;  %1288 = vmatprep.mubr.bf16.mxu0 %v1082_v21  ;;  %2156 = vmatpush3.bf16.msra.mxu0 %v2314_v2 }
 0x202   : > { %v1017_v8 = vadd.f32 %v1016_v25, %v2738_v7  ;;  %v1018_v11 = vpop.f32.mrb[23].mxu1  ;;  %1289 = vmatmul.mubr.bf16.gmra.mrb[48].mxu0 %v1081_v20  ;;  %v1061_v27 = vmax.f32 %v1013_v23, 0.0  ;;  %2157 = vmatprep.subr.bf16.mxu0 %v2803_v3 }
 0x203   : > { %v1019_v26 = vadd.f32 %v1018_v11, %v2742_v10  ;;  %v1062_v29 = vmax.f32 %v1015_v24, 0.0 }
 0x204   : > { %v1063_v28 = vmax.f32 %v1017_v8, 0.0 }
 0x205   : > { %v1064_v30 = vmax.f32 %v1019_v26, 0.0  ;;  %2158 = vmatpush3.bf16.msra.mxu0 %v2803_v3 }
 0x206   : > { %v1083_v31 = vpack.c.bf16 %v1063_v28, %v1061_v27  ;;  %2159 = vmatprep.subr.bf16.mxu0 %v2809_v12 }
 0x207   : > { %v1084_v32 = vpack.c.bf16 %v1064_v30, %v1062_v29  ;;  %v1022_v33 = vpop.f32.mrb[24].mxu1 }
 0x208   : > { %v1023_v34 = vadd.f32 %v1022_v33, %v2738_v7  ;;  %v1024_v35 = vpop.f32.mrb[25].mxu1 }
 0x209   : > { %v1025_v36 = vadd.f32 %v1024_v35, %v2742_v10  ;;  %v1026_v37 = vpop.f32.mrb[26].mxu1  ;;  %1296 = vmatprep.mubr.bf16.mxu0 %v1084_v32  ;;  %2160 = vmatpush3.bf16.msra.mxu0 %v2809_v12 }
 0x20a   : > { %v1027_v38 = vadd.f32 %v1026_v37, %v2738_v7  ;;  %v1028_v39 = vpop.f32.mrb[27].mxu1  ;;  %1297 = vmatmul.mubr.bf16.gmra.mrb[52].mxu0 %v1083_v31  ;;  %v1065_v41 = vmax.f32 %v1023_v34, 0.0  ;;  %2161 = vmatprep.subr.bf16.mxu0 %v2816_v13 }
 0x20b   : > { %v1029_v40 = vadd.f32 %v1028_v39, %v2742_v10  ;;  %v1066_v43 = vmax.f32 %v1025_v36, 0.0 }
 0x20c   : > { %v1067_v42 = vmax.f32 %v1027_v38, 0.0 }
 0x20d   : > { %v1068_v44 = vmax.f32 %v1029_v40, 0.0  ;;  %2162 = vmatpush3.bf16.msra.mxu0 %v2816_v13 }
 0x20e   : > { %v1085_v45 = vpack.c.bf16 %v1067_v42, %v1065_v41 }
 0x20f   : > { %v1086_v46 = vpack.c.bf16 %v1068_v44, %v1066_v43  ;;  %v1032_v47 = vpop.f32.mrb[28].mxu1 }
 0x210   : > { %v1033_v48 = vadd.f32 %v1032_v47, %v2738_v7  ;;  %v1034_v49 = vpop.f32.mrb[29].mxu1 }
 0x211   : > { %v1035_v50 = vadd.f32 %v1034_v49, %v2742_v10  ;;  %v1036_v51 = vpop.f32.mrb[30].mxu1  ;;  %1304 = vmatprep.mubr.bf16.mxu0 %v1086_v46 }
 0x212   : > { %v1037_v52 = vadd.f32 %v1036_v51, %v2738_v7  ;;  %v1038_v53 = vpop.f32.mrb[31].mxu1  ;;  %1305 = vmatmul.mubr.bf16.gmra.mrb[56].mxu0 %v1085_v45  ;;  %v1069_v55 = vmax.f32 %v1033_v48, 0.0  ;;  %v2308_v7 = vld [vmem:[%s2996_s7 + $0x20] sm:$0xff]  }
 0x213   : > { %v1039_v54 = vadd.f32 %v1038_v53, %v2742_v10  ;;  %v1070_v57 = vmax.f32 %v1035_v50, 0.0  ;;  %2127 = vmatprep.subr.bf16.mxu1 %v2308_v7  ;;  %v2309_v10 = vld [vmem:[%s2996_s7 + $0x28] sm:$0xff]  }
 0x214   : > { %v1071_v56 = vmax.f32 %v1037_v52, 0.0  ;;  %2128 = vmatpush3.bf16.msra.mxu1 %v2308_v7 }
 0x215   : > { %v1072_v58 = vmax.f32 %v1039_v54, 0.0  ;;  %2129 = vmatprep.subr.bf16.mxu1 %v2309_v10 }
 0x216   : > { %v1087_v59 = vpack.c.bf16 %v1071_v56, %v1069_v55 }
 0x217   : > { %v1088_v60 = vpack.c.bf16 %v1072_v58, %v1070_v57 }
 0x218   : > { %2130 = vmatpush3.bf16.msra.mxu1 %v2309_v10 }
 0x219   : > { %1312 = vmatprep.mubr.bf16.mxu0 %v1088_v60  ;;  %2131 = vmatprep.subr.bf16.mxu1 %v2310_v62 }
 0x21a   : > { %1313 = vmatmul.mubr.bf16.gmra.mrb[60].mxu0 %v1087_v59 }
 0x21c   : > { %2132 = vmatpush3.bf16.msra.mxu1 %v2310_v62 }
 0x21d   : > { %2133 = vmatprep.subr.bf16.mxu1 %v2311_v63 }
 0x220   : > { %2134 = vmatpush3.bf16.msra.mxu1 %v2311_v63 }
 0x221   : > { %2183 = vmatprep.subr.bf16.mxu1 %v2312_v0 }
 0x2b5   : > { %v2039_v4 = vpop.f32.mrb[32].mxu0 }
 0x2b6   : > { %v2040_v6 = vpop.f32.mrb[33].mxu0 }
 0x2b7   : > { %v2041_v14 = vadd.f32 %v2040_v6, %v2039_v4  ;;  %v2042_v15 = vpop.f32.mrb[34].mxu0 }
 0x2b8   : > { %v2043_v16 = vpop.f32.mrb[35].mxu0 }
 0x2b9   : > { %v1259_v17 = vadd.f32 %v2041_v14, %v2824_v5  ;;  %v2044_v18 = vadd.f32 %v2043_v16, %v2042_v15 }
 0x2bb   : > { %v1262_v19 = vadd.f32 %v2044_v18, %v2824_v5  ;;  %v1321_v20 = vmax.f32 %v1259_v17, 0.0 }
 0x2bd   : > { %v1322_v21 = vmax.f32 %v1262_v19, 0.0  ;;  %v2045_v22 = vpop.f32.mrb[36].mxu0 }
 0x2be   : > { %v2046_v23 = vpop.f32.mrb[37].mxu0 }
 0x2bf   : > { %v2047_v9 = vadd.f32 %v2046_v23, %v2045_v22  ;;  %v2048_v24 = vpop.f32.mrb[38].mxu0  ;;  %v1337_v25 = vpack.c.bf16 %v1322_v21, %v1321_v20 }
 0x2c0   : > { %v2049_v8 = vpop.f32.mrb[39].mxu0 }
 0x2c1   : > { %v1267_v11 = vadd.f32 %v2047_v9, %v2824_v5  ;;  %v2050_v26 = vadd.f32 %v2049_v8, %v2048_v24  ;;  %2135 = vmatprep.mubr.bf16.mxu1 %v1337_v25 }
 0x2c3   : > { %v1270_v27 = vadd.f32 %v2050_v26, %v2824_v5  ;;  %v1323_v28 = vmax.f32 %v1267_v11, 0.0 }
 0x2c5   : > { %v1324_v29 = vmax.f32 %v1270_v27, 0.0  ;;  %v2051_v30 = vpop.f32.mrb[40].mxu0 }
 0x2c6   : > { %v2052_v31 = vpop.f32.mrb[41].mxu0 }
 0x2c7   : > { %v1338_v32 = vpack.c.bf16 %v1324_v29, %v1323_v28  ;;  %v2053_v33 = vadd.f32 %v2052_v31, %v2051_v30  ;;  %v2054_v34 = vpop.f32.mrb[42].mxu0 }
 0x2c8   : > { %v2055_v35 = vpop.f32.mrb[43].mxu0 }
 0x2c9   : > { %v1275_v36 = vadd.f32 %v2053_v33, %v2824_v5  ;;  %v2056_v37 = vadd.f32 %v2055_v35, %v2054_v34  ;;  %2136 = vmatmul.mubr.bf16.vlgmr.msra.gmra.mrb[32].mxu1 %v1338_v32  ;;  %v2318_v34 = vld [vmem:[%s2998_s9 + $0x30] sm:$0xff]   ;;  %v2319_v35 = vld [vmem:[%s2998_s9 + $0x38] sm:$0xff]  }
 0x2ca   : > { %2191 = vmatpush3.bf16.msra.mxu1 %v2312_v0  ;;  %2163 = vmatprep.subr.bf16.mxu0 %v2318_v34 }
 0x2cb   : > { %v1278_v38 = vadd.f32 %v2056_v37, %v2824_v5  ;;  %2184 = vmatprep.subr.bf16.mxu1 %v2313_v1  ;;  %v1325_v39 = vmax.f32 %v1275_v36, 0.0  ;;  %2164 = vmatpush3.bf16.msra.mxu0 %v2318_v34 }
 0x2cc   : > { %2165 = vmatprep.subr.bf16.mxu0 %v2319_v35 }
 0x2cd   : > { %v1326_v40 = vmax.f32 %v1278_v38, 0.0  ;;  %v2057_v41 = vpop.f32.mrb[44].mxu0 }
 0x2ce   : > { %v2058_v42 = vpop.f32.mrb[45].mxu0  ;;  %2192 = vmatpush3.bf16.msra.mxu1 %v2313_v1 }
 0x2cf   : > { %v2059_v43 = vadd.f32 %v2058_v42, %v2057_v41  ;;  %v2060_v44 = vpop.f32.mrb[46].mxu0  ;;  %v1339_v45 = vpack.c.bf16 %v1326_v40, %v1325_v39  ;;  %2185 = vmatprep.subr.bf16.mxu1 %v2314_v2  ;;  %2166 = vmatpush3.bf16.msra.mxu0 %v2319_v35 }
 0x2d0   : > { %v2061_v46 = vpop.f32.mrb[47].mxu0 }
 0x2d1   : > { %v1283_v47 = vadd.f32 %v2059_v43, %v2824_v5  ;;  %v2062_v48 = vadd.f32 %v2061_v46, %v2060_v44  ;;  %2139 = vmatprep.mubr.bf16.mxu1 %v1339_v45 }
 0x2d2   : > { %2193 = vmatpush3.bf16.msra.mxu1 %v2314_v2 }
 0x2d3   : > { %v1286_v49 = vadd.f32 %v2062_v48, %v2824_v5  ;;  %2186 = vmatprep.subr.bf16.mxu1 %v2803_v3  ;;  %v1327_v50 = vmax.f32 %v1283_v47, 0.0 }
 0x2d5   : > { %v1328_v51 = vmax.f32 %v1286_v49, 0.0  ;;  %v2063_v52 = vpop.f32.mrb[48].mxu0 }
 0x2d6   : > { %v2064_v53 = vpop.f32.mrb[49].mxu0  ;;  %2194 = vmatpush3.bf16.msra.mxu1 %v2803_v3 }
 0x2d7   : > { %v2065_v54 = vadd.f32 %v2064_v53, %v2063_v52  ;;  %v2066_v55 = vpop.f32.mrb[50].mxu0  ;;  %v1340_v56 = vpack.c.bf16 %v1328_v51, %v1327_v50  ;;  %2187 = vmatprep.subr.bf16.mxu1 %v2809_v12 }
 0x2d8   : > { %v2067_v57 = vpop.f32.mrb[51].mxu0 }
 0x2d9   : > { %v1291_v58 = vadd.f32 %v2065_v54, %v2824_v5  ;;  %v2068_v59 = vadd.f32 %v2067_v57, %v2066_v55  ;;  %2140 = vmatmul.mubr.bf16.gmra.mrb[36].mxu1 %v1340_v56 }
 0x2da   : > { %2195 = vmatpush3.bf16.msra.mxu1 %v2809_v12 }
 0x2db   : > { %v1294_v60 = vadd.f32 %v2068_v59, %v2824_v5  ;;  %2188 = vmatprep.subr.bf16.mxu1 %v2816_v13  ;;  %v1329_v61 = vmax.f32 %v1291_v58, 0.0 }
 0x2dd   : > { %v1330_v7 = vmax.f32 %v1294_v60, 0.0  ;;  %v2069_v10 = vpop.f32.mrb[52].mxu0 }
 0x2de   : > { %v2070_v62 = vpop.f32.mrb[53].mxu0  ;;  %2196 = vmatpush3.bf16.msra.mxu1 %v2816_v13 }
 0x2df   : > { %v2071_v63 = vadd.f32 %v2070_v62, %v2069_v10  ;;  %v2072_v0 = vpop.f32.mrb[54].mxu0  ;;  %v1341_v1 = vpack.c.bf16 %v1330_v7, %v1329_v61  ;;  %2189 = vmatprep.subr.bf16.mxu1 %v2318_v34 }
 0x2e0   : > { %v2073_v2 = vpop.f32.mrb[55].mxu0 }
 0x2e1   : > { %v1299_v3 = vadd.f32 %v2071_v63, %v2824_v5  ;;  %v2074_v4 = vadd.f32 %v2073_v2, %v2072_v0  ;;  %2143 = vmatprep.mubr.bf16.mxu1 %v1341_v1 }
 0x2e2   : > { %2197 = vmatpush3.bf16.msra.mxu1 %v2318_v34 }
 0x2e3   : > { %v1302_v12 = vadd.f32 %v2074_v4, %v2824_v5  ;;  %v1331_v6 = vmax.f32 %v1299_v3, 0.0  ;;  %2190 = vmatprep.subr.bf16.mxu1 %v2319_v35 }
 0x2e5   : > { %v1332_v14 = vmax.f32 %v1302_v12, 0.0  ;;  %v2075_v15 = vpop.f32.mrb[56].mxu0 }
 0x2e6   : > { %v2076_v16 = vpop.f32.mrb[57].mxu0  ;;  %2198 = vmatpush3.bf16.msra.mxu1 %v2319_v35 }
 0x2e7   : > { %v2077_v17 = vadd.f32 %v2076_v16, %v2075_v15  ;;  %v2078_v18 = vpop.f32.mrb[58].mxu0  ;;  %v1342_v19 = vpack.c.bf16 %v1332_v14, %v1331_v6 }
 0x2e8   : > { %v2079_v20 = vpop.f32.mrb[59].mxu0 }
 0x2e9   : > { %v1307_v13 = vadd.f32 %v2077_v17, %v2824_v5  ;;  %v2080_v21 = vadd.f32 %v2079_v20, %v2078_v18  ;;  %2144 = vmatmul.mubr.bf16.gmra.mrb[40].mxu1 %v1342_v19 }
 0x2eb   : > { %v1310_v22 = vadd.f32 %v2080_v21, %v2824_v5  ;;  %v1333_v23 = vmax.f32 %v1307_v13, 0.0 }
 0x2ed   : > { %v1334_v9 = vmax.f32 %v1310_v22, 0.0  ;;  %v2081_v24 = vpop.f32.mrb[60].mxu0 }
 0x2ee   : > { %v2082_v25 = vpop.f32.mrb[61].mxu0 }
 0x2ef   : > { %v2083_v8 = vadd.f32 %v2082_v25, %v2081_v24  ;;  %v2084_v11 = vpop.f32.mrb[62].mxu0  ;;  %v1343_v26 = vpack.c.bf16 %v1334_v9, %v1333_v23 }
 0x2f0   : > { %v2085_v27 = vpop.f32.mrb[63].mxu0 }
 0x2f1   : > { %v1315_v28 = vadd.f32 %v2083_v8, %v2824_v5  ;;  %v2086_v29 = vadd.f32 %v2085_v27, %v2084_v11  ;;  %2147 = vmatprep.mubr.bf16.mxu1 %v1343_v26 }
 0x2f3   : > { %v1318_v30 = vadd.f32 %v2086_v29, %v2824_v5  ;;  %v1335_v31 = vmax.f32 %v1315_v28, 0.0  ;;  %v2003_v5 = vld [vmem:[%s2997_s8] ss:$0 sm:$0xff] }
 0x2f4   : > { %v2012_v29 = vld [vmem:[%s2999_s10] ss:$0 sm:$0xff] }
 0x2f5   : > { %v1336_v32 = vmax.f32 %v1318_v30, 0.0 }
 0x2f7   : > { %v1344_v33 = vpack.c.bf16 %v1336_v32, %v1335_v31 }
 0x2f9   : > { %2148 = vmatmul.mubr.bf16.gmra.mrb[44].mxu1 %v1344_v33 }
 0x39c   : > { %v2137_v36 = vpop.f32.mrb[32].mxu1 }
 0x39d   : > { %v1459_v37 = vadd.f32 %v2137_v36, %v2003_v5  ;;  %v1450_v38 = vpop.f32.mrb[33].mxu1 }
 0x39e   : > { %v1451_v39 = vadd.f32 %v2003_v5, %v1450_v38  ;;  %v2138_v40 = vpop.f32.mrb[34].mxu1 }
 0x39f   : > { %v1462_v41 = vadd.f32 %v2138_v40, %v2003_v5  ;;  %v1453_v42 = vpop.f32.mrb[35].mxu1  ;;  %v1515_v44 = vmax.f32 %v1459_v37, 0.0 }
 0x3a0   : > { %v1454_v43 = vadd.f32 %v2003_v5, %v1453_v42  ;;  %v1513_v46 = vmax.f32 %v1451_v39, 0.0 }
 0x3a1   : > { %v1516_v45 = vmax.f32 %v1462_v41, 0.0 }
 0x3a2   : > { %v1514_v47 = vmax.f32 %v1454_v43, 0.0 }
 0x3a3   : > { %v1530_v48 = vpack.c.bf16 %v1516_v45, %v1515_v44 }
 0x3a4   : > { %v1529_v49 = vpack.c.bf16 %v1514_v47, %v1513_v46 }
 0x3a6   : > { %2167 = vmatprep.mubr.bf16.mxu0 %v1529_v49 }
 0x3a7   : > { %2168 = vmatmul.mubr.bf16.vlgmr.msra.gmra.mrb[64].mxu0 %v1530_v48 }
 0x3ac   : > { %v2141_v50 = vpop.f32.mrb[36].mxu1 }
 0x3ad   : > { %v1475_v51 = vadd.f32 %v2141_v50, %v2003_v5  ;;  %v1466_v52 = vpop.f32.mrb[37].mxu1 }
 0x3ae   : > { %v1467_v53 = vadd.f32 %v2003_v5, %v1466_v52  ;;  %v2142_v54 = vpop.f32.mrb[38].mxu1 }
 0x3af   : > { %v1478_v55 = vadd.f32 %v2142_v54, %v2003_v5  ;;  %v1469_v56 = vpop.f32.mrb[39].mxu1  ;;  %v1519_v58 = vmax.f32 %v1475_v51, 0.0 }
 0x3b0   : > { %v1470_v57 = vadd.f32 %v2003_v5, %v1469_v56  ;;  %v1517_v60 = vmax.f32 %v1467_v53, 0.0 }
 0x3b1   : > { %v1520_v59 = vmax.f32 %v1478_v55, 0.0 }
 0x3b2   : > { %v1518_v61 = vmax.f32 %v1470_v57, 0.0 }
 0x3b3   : > { %v1532_v7 = vpack.c.bf16 %v1520_v59, %v1519_v58 }
 0x3b4   : > { %v1531_v10 = vpack.c.bf16 %v1518_v61, %v1517_v60 }
 0x3b6   : > { %2171 = vmatprep.mubr.bf16.mxu0 %v1531_v10 }
 0x3b7   : > { %2172 = vmatmul.mubr.bf16.gmra.mrb[68].mxu0 %v1532_v7 }
 0x3bc   : > { %v2145_v62 = vpop.f32.mrb[40].mxu1 }
 0x3bd   : > { %v1491_v63 = vadd.f32 %v2145_v62, %v2003_v5  ;;  %v1482_v0 = vpop.f32.mrb[41].mxu1 }
 0x3be   : > { %v1483_v1 = vadd.f32 %v2003_v5, %v1482_v0  ;;  %v2146_v2 = vpop.f32.mrb[42].mxu1 }
 0x3bf   : > { %v1494_v3 = vadd.f32 %v2146_v2, %v2003_v5  ;;  %v1485_v4 = vpop.f32.mrb[43].mxu1  ;;  %v1523_v6 = vmax.f32 %v1491_v63, 0.0 }
 0x3c0   : > { %v1486_v12 = vadd.f32 %v2003_v5, %v1485_v4  ;;  %v1521_v15 = vmax.f32 %v1483_v1, 0.0 }
 0x3c1   : > { %v1524_v14 = vmax.f32 %v1494_v3, 0.0 }
 0x3c2   : > { %v1522_v16 = vmax.f32 %v1486_v12, 0.0 }
 0x3c3   : > { %v1534_v17 = vpack.c.bf16 %v1524_v14, %v1523_v6 }
 0x3c4   : > { %v1533_v18 = vpack.c.bf16 %v1522_v16, %v1521_v15 }
 0x3c6   : > { %2175 = vmatprep.mubr.bf16.mxu1 %v1533_v18 }
 0x3c7   : > { %2176 = vmatmul.mubr.bf16.vlgmr.msra.gmra.mrb[48].mxu1 %v1534_v17 }
 0x3cc   : > { %v2149_v19 = vpop.f32.mrb[44].mxu1 }
 0x3cd   : > { %v1507_v20 = vadd.f32 %v2149_v19, %v2003_v5  ;;  %v1498_v13 = vpop.f32.mrb[45].mxu1 }
 0x3ce   : > { %v1499_v21 = vadd.f32 %v2003_v5, %v1498_v13  ;;  %v2150_v22 = vpop.f32.mrb[46].mxu1 }
 0x3cf   : > { %v1510_v23 = vadd.f32 %v2150_v22, %v2003_v5  ;;  %v1501_v9 = vpop.f32.mrb[47].mxu1  ;;  %v1527_v25 = vmax.f32 %v1507_v20, 0.0 }
 0x3d0   : > { %v1502_v24 = vadd.f32 %v2003_v5, %v1501_v9  ;;  %v1525_v11 = vmax.f32 %v1499_v21, 0.0 }
 0x3d1   : > { %v1528_v8 = vmax.f32 %v1510_v23, 0.0 }
 0x3d2   : > { %v1526_v26 = vmax.f32 %v1502_v24, 0.0 }
 0x3d3   : > { %v1536_v27 = vpack.c.bf16 %v1528_v8, %v1527_v25 }
 0x3d4   : > { %v1535_v28 = vpack.c.bf16 %v1526_v26, %v1525_v11 }
 0x3d6   : > { %2179 = vmatprep.mubr.bf16.mxu1 %v1535_v28 }
 0x3d7   : > { %2180 = vmatmul.mubr.bf16.gmra.mrb[52].mxu1 %v1536_v27 }
 0x47a   : > { %v2169_v30 = vpop.f32.mrb[64].mxu0 }
 0x47b   : > { %v1651_v31 = vadd.f32 %v2169_v30, %v2012_v29  ;;  %v1642_v32 = vpop.f32.mrb[65].mxu0 }
 0x47c   : > { %v1643_v33 = vadd.f32 %v2012_v29, %v1642_v32  ;;  %v2170_v34 = vpop.f32.mrb[66].mxu0 }
 0x47d   : > { %1709 = vmax.xlane.f32.xlu1 %v1651_v31  ;;  %v1645_v35 = vpop.f32.mrb[67].mxu0  ;;  %v1654_v5 = vadd.f32 %v2170_v34, %v2012_v29 }
 0x47e   : > { %1705 = vmax.xlane.f32.xlu0 %v1643_v33  ;;  %v1646_v36 = vadd.f32 %v2012_v29, %v1645_v35 }
 0x481   : > { %1711 = vmax.xlane.f32.xlu1 %v1654_v5 }
 0x482   : > { %1707 = vmax.xlane.f32.xlu0 %v1646_v36 }
 0x48a   : > { %v2173_v37 = vpop.f32.mrb[68].mxu0 }
 0x48b   : > { %v1667_v38 = vadd.f32 %v2173_v37, %v2012_v29  ;;  %v1658_v39 = vpop.f32.mrb[69].mxu0 }
 0x48c   : > { %v2174_v40 = vpop.f32.mrb[70].mxu0  ;;  %v2860_v43 = vadd.f32 %v2012_v29, %v1658_v39 }
 0x48d   : > { %v1670_v41 = vadd.f32 %v2174_v40, %v2012_v29  ;;  %v1661_v42 = vpop.f32.mrb[71].mxu0  ;;  %1717 = vmax.xlane.f32.xlu0 %v1667_v38 }
 0x48e   : > { %v2862_v44 = vadd.f32 %v2012_v29, %v1661_v42 }
 0x48f   : > { %1719 = vmax.xlane.f32.xlu1 %v1670_v41 }
 0x491   : > { %1713 = vmax.xlane.f32.xlu0 %v2860_v43 }
 0x493   : > { %1715 = vmax.xlane.f32.xlu1 %v2862_v44 }
 0x49a   : > { %v2177_v45 = vpop.f32.mrb[48].mxu1 }
 0x49b   : > { %v2866_v46 = vadd.f32 %v2177_v45, %v2012_v29  ;;  %v1674_v47 = vpop.f32.mrb[49].mxu1 }
 0x49c   : > { %v2178_v48 = vpop.f32.mrb[50].mxu1  ;;  %v2871_v51 = vadd.f32 %v2012_v29, %v1674_v47 }
 0x49d   : > { %v2868_v49 = vadd.f32 %v2178_v48, %v2012_v29  ;;  %v1677_v50 = vpop.f32.mrb[51].mxu1  ;;  %1725 = vmax.xlane.f32.xlu0 %v2866_v46 }
 0x49e   : > { %v2874_v52 = vadd.f32 %v2012_v29, %v1677_v50 }
 0x49f   : > { %1727 = vmax.xlane.f32.xlu1 %v2868_v49 }
 0x4a1   : > { %1721 = vmax.xlane.f32.xlu0 %v2871_v51 }
 0x4a3   : > { %1723 = vmax.xlane.f32.xlu1 %v2874_v52 }
 0x4aa   : > { %v2181_v53 = vpop.f32.mrb[52].mxu1 }
 0x4ab   : > { %v1690_v54 = vpop.f32.mrb[53].mxu1  ;;  %v2883_v59 = vadd.f32 %v2181_v53, %v2012_v29 }
 0x4ac   : > { %v2878_v55 = vadd.f32 %v2012_v29, %v1690_v54  ;;  %v2182_v56 = vpop.f32.mrb[54].mxu1 }
 0x4ad   : > { %v1693_v57 = vpop.f32.mrb[55].mxu1  ;;  %v2886_v60 = vadd.f32 %v2182_v56, %v2012_v29 }
 0x4ae   : > { %v2880_v58 = vadd.f32 %v2012_v29, %v1693_v57  ;;  %1729 = vmax.xlane.f32.xlu0 %v2878_v55 }
 0x4b0   : > { %1731 = vmax.xlane.f32.xlu1 %v2880_v58 }
 0x4b2   : > { %1733 = vmax.xlane.f32.xlu0 %v2883_v59 }
 0x4b4   : > { %1735 = vmax.xlane.f32.xlu1 %v2886_v60 }
 0x50a   : > { %v1710_v61 = vpop.xlane.xlu1 %1709 }
 0x50b   : > { %v1739_v7 = vsub.f32 %v1651_v31, %v1710_v61  ;;  %v1706_v10 = vpop.xlane.xlu0 %1705 }
 0x50c   : > { %v1737_v62 = vsub.f32 %v1643_v33, %v1706_v10 }
 0x50d   : > { %v1757_v63 = vmul.f32 1.442695, %v1739_v7 }
 0x50e   : > { %v1753_v0 = vmul.f32 1.442695, %v1737_v62  ;;  %v1712_v1 = vpop.xlane.xlu1 %1711 }
 0x50f   : > { %2320 = vpow2.f32 %v1757_v63  ;;  %v1740_v2 = vsub.f32 %v1654_v5, %v1712_v1  ;;  %v1708_v3 = vpop.xlane.xlu0 %1707 }
 0x510   : > { %v1738_v4 = vsub.f32 %v1646_v36, %v1708_v3  ;;  %2322 = vpow2.f32 %v1753_v0 }
 0x511   : > { %v1759_v12 = vmul.f32 1.442695, %v1740_v2 }
 0x512   : > { %v1755_v6 = vmul.f32 1.442695, %v1738_v4 }
 0x513   : > { %2324 = vpow2.f32 %v1759_v12 }
 0x514   : > { %2326 = vpow2.f32 %v1755_v6 }
 0x519   : > { %v2890_v14 = vpop.eup %2320 }
 0x51a   : > { %1789 = vadd.xlane.f32.xlu0 %v2890_v14  ;;  %v1718_v15 = vpop.xlane.xlu0 %1717  ;;  %v2893_v17 = vpop.eup %2322 }
 0x51b   : > { %v1743_v16 = vsub.f32 %v1667_v38, %v1718_v15 }
 0x51c   : > { %v1720_v18 = vpop.xlane.xlu1 %1719 }
 0x51d   : > { %v2895_v19 = vpop.eup %2324  ;;  %v1765_v20 = vmul.f32 1.442695, %v1743_v16  ;;  %v1744_v13 = vsub.f32 %v1670_v41, %v1720_v18 }
 0x51e   : > { %1791 = vadd.xlane.f32.xlu1 %v2895_v19  ;;  %1785 = vadd.xlane.f32.xlu0 %v2893_v17  ;;  %v1714_v21 = vpop.xlane.xlu0 %1713  ;;  %v2900_v24 = vpop.eup %2326 }
 0x51f   : > { %2328 = vpow2.f32 %v1765_v20  ;;  %v1767_v22 = vmul.f32 1.442695, %v1744_v13  ;;  %v1741_v23 = vsub.f32 %v2860_v43, %v1714_v21 }
 0x520   : > { %v1716_v9 = vpop.xlane.xlu1 %1715 }
 0x521   : > { %2330 = vpow2.f32 %v1767_v22  ;;  %v1761_v25 = vmul.f32 1.442695, %v1741_v23  ;;  %v1742_v8 = vsub.f32 %v2862_v44, %v1716_v9 }
 0x522   : > { %1787 = vadd.xlane.f32.xlu1 %v2900_v24 }
 0x523   : > { %2332 = vpow2.f32 %v1761_v25  ;;  %v1763_v11 = vmul.f32 1.442695, %v1742_v8 }
 0x525   : > { %2334 = vpow2.f32 %v1763_v11 }
 0x529   : > { %v2904_v26 = vpop.eup %2328 }
 0x52a   : > { %1797 = vadd.xlane.f32.xlu0 %v2904_v26  ;;  %v1726_v27 = vpop.xlane.xlu0 %1725 }
 0x52b   : > { %v2907_v28 = vpop.eup %2330  ;;  %v1747_v29 = vsub.f32 %v2866_v46, %v1726_v27 }
 0x52c   : > { %v1728_v30 = vpop.xlane.xlu1 %1727  ;;  %1799 = vadd.xlane.f32.xlu1 %v2907_v28 }
 0x52d   : > { %v2911_v31 = vpop.eup %2332  ;;  %v1773_v32 = vmul.f32 1.442695, %v1747_v29  ;;  %v1748_v33 = vsub.f32 %v2868_v49, %v1728_v30 }
 0x52e   : > { %1793 = vadd.xlane.f32.xlu0 %v2911_v31  ;;  %v1722_v34 = vpop.xlane.xlu0 %1721 }
 0x52f   : > { %v2915_v35 = vpop.eup %2334  ;;  %2336 = vpow2.f32 %v1773_v32  ;;  %v1775_v5 = vmul.f32 1.442695, %v1748_v33  ;;  %v1745_v36 = vsub.f32 %v2871_v51, %v1722_v34 }
 0x530   : > { %v1724_v37 = vpop.xlane.xlu1 %1723  ;;  %1795 = vadd.xlane.f32.xlu1 %v2915_v35 }
 0x531   : > { %2338 = vpow2.f32 %v1775_v5  ;;  %v1769_v38 = vmul.f32 1.442695, %v1745_v36  ;;  %v1746_v39 = vsub.f32 %v2874_v52, %v1724_v37 }
 0x533   : > { %2340 = vpow2.f32 %v1769_v38  ;;  %v1771_v40 = vmul.f32 1.442695, %v1746_v39 }
 0x535   : > { %2342 = vpow2.f32 %v1771_v40 }
 0x539   : > { %v2920_v41 = vpop.eup %2336 }
 0x53a   : > { %1805 = vadd.xlane.f32.xlu0 %v2920_v41 }
 0x53b   : > { %v2923_v42 = vpop.eup %2338  ;;  %v1730_v43 = vpop.xlane.xlu0 %1729 }
 0x53c   : > { %v1749_v44 = vsub.f32 %v2878_v55, %v1730_v43  ;;  %1807 = vadd.xlane.f32.xlu1 %v2923_v42 }
 0x53d   : > { %v2927_v45 = vpop.eup %2340  ;;  %v1732_v46 = vpop.xlane.xlu1 %1731 }
 0x53e   : > { %v1777_v47 = vmul.f32 1.442695, %v1749_v44  ;;  %v1750_v48 = vsub.f32 %v2880_v58, %v1732_v46  ;;  %1801 = vadd.xlane.f32.xlu0 %v2927_v45 }
 0x53f   : > { %v2931_v49 = vpop.eup %2342  ;;  %v1734_v50 = vpop.xlane.xlu0 %1733 }
 0x540   : > { %2344 = vpow2.f32 %v1777_v47  ;;  %v1779_v51 = vmul.f32 1.442695, %v1750_v48  ;;  %v1751_v52 = vsub.f32 %v2883_v59, %v1734_v50  ;;  %1803 = vadd.xlane.f32.xlu1 %v2931_v49 }
 0x541   : > { %v1736_v53 = vpop.xlane.xlu1 %1735 }
 0x542   : > { %2346 = vpow2.f32 %v1779_v51  ;;  %v1781_v54 = vmul.f32 1.442695, %v1751_v52  ;;  %v1752_v55 = vsub.f32 %v2886_v60, %v1736_v53 }
 0x544   : > { %2348 = vpow2.f32 %v1781_v54  ;;  %v1783_v56 = vmul.f32 1.442695, %v1752_v55 }
 0x546   : > { %2350 = vpow2.f32 %v1783_v56 }
 0x54a   : > { %v2936_v57 = vpop.eup %2344 }
 0x54b   : > { %1809 = vadd.xlane.f32.xlu0 %v2936_v57 }
 0x54c   : > { %v2939_v58 = vpop.eup %2346 }
 0x54d   : > { %1811 = vadd.xlane.f32.xlu1 %v2939_v58 }
 0x54e   : > { %v2942_v59 = vpop.eup %2348 }
 0x54f   : > { %1813 = vadd.xlane.f32.xlu0 %v2942_v59 }
 0x550   : > { %v2945_v61 = vpop.eup %2350 }
 0x551   : > { %1815 = vadd.xlane.f32.xlu1 %v2945_v61 }
 0x5a7   : > { %v1790_v60 = vpop.xlane.xlu0 %1789 }
 0x5a8   : > { %2352 = vrcp.f32 %v1790_v60 }
 0x5ab   : > { %v1792_v7 = vpop.xlane.xlu1 %1791  ;;  %v1786_v10 = vpop.xlane.xlu0 %1785 }
 0x5ac   : > { %2354 = vrcp.f32 %v1792_v7 }
 0x5ad   : > { %2356 = vrcp.f32 %v1786_v10 }
 0x5af   : > { %v1788_v62 = vpop.xlane.xlu1 %1787 }
 0x5b0   : > { %2358 = vrcp.f32 %v1788_v62 }
 0x5b2   : > { %v2353_v63 = vpop.eup %2352 }
 0x5b3   : > { %v1822_v0 = vmul.f32 %v2353_v63, %v2890_v14 }
 0x5b5   : > { %1851 = vst [vmem:[%s2952_s12 + $0x10] sm:$0xff] %v1822_v0 }
 0x5b6   : > { %v2355_v1 = vpop.eup %2354 }
 0x5b7   : > { %v2357_v2 = vpop.eup %2356  ;;  %v1824_v3 = vmul.f32 %v2355_v1, %v2895_v19  ;;  %v1798_v4 = vpop.xlane.xlu0 %1797 }
 0x5b8   : > { %v1818_v12 = vmul.f32 %v2357_v2, %v2893_v17  ;;  %2360 = vrcp.f32 %v1798_v4 }
 0x5b9   : > { %1852 = vst [vmem:[%s2952_s12 + $0x18] sm:$0xff] %v1824_v3  ;;  %v1800_v6 = vpop.xlane.xlu1 %1799 }
 0x5ba   : > { %v2359_v15 = vpop.eup %2358  ;;  %1849 = vst [vmem:[%s2952_s12] sm:$0xff] %v1818_v12  ;;  %2362 = vrcp.f32 %v1800_v6 }
 0x5bb   : > { %v1820_v16 = vmul.f32 %v2359_v15, %v2900_v24  ;;  %v1794_v14 = vpop.xlane.xlu0 %1793 }
 0x5bc   : > { %2364 = vrcp.f32 %v1794_v14 }
 0x5bd   : > { %1850 = vst [vmem:[%s2952_s12 + $0x8] sm:$0xff] %v1820_v16  ;;  %v1796_v18 = vpop.xlane.xlu1 %1795 }
 0x5be   : > { %2366 = vrcp.f32 %v1796_v18 }
 0x5c2   : > { %v2361_v19 = vpop.eup %2360 }
 0x5c3   : > { %v1830_v17 = vmul.f32 %v2361_v19, %v2904_v26 }
 0x5c4   : > { %v2363_v20 = vpop.eup %2362 }
 0x5c5   : > { %1855 = vst [vmem:[%s2952_s12 + $0x30] sm:$0xff] %v1830_v17  ;;  %v1832_v13 = vmul.f32 %v2363_v20, %v2907_v28 }
 0x5c6   : > { %v2365_v21 = vpop.eup %2364 }
 0x5c7   : > { %1856 = vst [vmem:[%s2952_s12 + $0x38] sm:$0xff] %v1832_v13  ;;  %v1826_v22 = vmul.f32 %v2365_v21, %v2911_v31  ;;  %v1806_v23 = vpop.xlane.xlu0 %1805 }
 0x5c8   : > { %v2367_v9 = vpop.eup %2366  ;;  %2368 = vrcp.f32 %v1806_v23 }
 0x5c9   : > { %1853 = vst [vmem:[%s2952_s12 + $0x20] sm:$0xff] %v1826_v22  ;;  %v1828_v24 = vmul.f32 %v2367_v9, %v2915_v35  ;;  %v1808_v25 = vpop.xlane.xlu1 %1807 }
 0x5ca   : > { %2370 = vrcp.f32 %v1808_v25 }
 0x5cb   : > { %1854 = vst [vmem:[%s2952_s12 + $0x28] sm:$0xff] %v1828_v24  ;;  %v1802_v8 = vpop.xlane.xlu0 %1801 }
 0x5cc   : > { %2372 = vrcp.f32 %v1802_v8 }
 0x5cd   : > { %v1804_v11 = vpop.xlane.xlu1 %1803 }
 0x5ce   : > { %2374 = vrcp.f32 %v1804_v11 }
 0x5d2   : > { %v2369_v26 = vpop.eup %2368 }
 0x5d3   : > { %v1838_v27 = vmul.f32 %v2369_v26, %v2920_v41 }
 0x5d4   : > { %v2371_v28 = vpop.eup %2370 }
 0x5d5   : > { %1859 = vst [vmem:[%s2952_s12 + $0x50] sm:$0xff] %v1838_v27  ;;  %v1840_v29 = vmul.f32 %v2371_v28, %v2923_v42 }
 0x5d6   : > { %v2373_v30 = vpop.eup %2372 }
 0x5d7   : > { %1860 = vst [vmem:[%s2952_s12 + $0x58] sm:$0xff] %v1840_v29  ;;  %v1834_v31 = vmul.f32 %v2373_v30, %v2927_v45 }
 0x5d8   : > { %v2375_v32 = vpop.eup %2374  ;;  %v1810_v33 = vpop.xlane.xlu0 %1809 }
 0x5d9   : > { %1857 = vst [vmem:[%s2952_s12 + $0x40] sm:$0xff] %v1834_v31  ;;  %v1836_v34 = vmul.f32 %v2375_v32, %v2931_v49  ;;  %2376 = vrcp.f32 %v1810_v33 }
 0x5da   : > { %v1812_v35 = vpop.xlane.xlu1 %1811 }
 0x5db   : > { %1858 = vst [vmem:[%s2952_s12 + $0x48] sm:$0xff] %v1836_v34  ;;  %2378 = vrcp.f32 %v1812_v35 }
 0x5dc   : > { %v1814_v5 = vpop.xlane.xlu0 %1813 }
 0x5dd   : > { %2380 = vrcp.f32 %v1814_v5 }
 0x5de   : > { %v1816_v36 = vpop.xlane.xlu1 %1815 }
 0x5df   : > { %2382 = vrcp.f32 %v1816_v36 }
 0x5e3   : > { %v2377_v37 = vpop.eup %2376 }
 0x5e4   : > { %v1842_v38 = vmul.f32 %v2377_v37, %v2936_v57 }
 0x5e5   : > { %v2379_v39 = vpop.eup %2378 }
 0x5e6   : > { %1861 = vst [vmem:[%s2952_s12 + $0x60] sm:$0xff] %v1842_v38  ;;  %v1844_v40 = vmul.f32 %v2379_v39, %v2939_v58 }
 0x5e7   : > { %v2381_v41 = vpop.eup %2380 }
 0x5e8   : > { %1862 = vst [vmem:[%s2952_s12 + $0x68] sm:$0xff] %v1844_v40  ;;  %v1846_v42 = vmul.f32 %v2381_v41, %v2942_v59 }
 0x5e9   : > { %v2383_v43 = vpop.eup %2382 }
 0x5ea   : > { %1863 = vst [vmem:[%s2952_s12 + $0x70] sm:$0xff] %v1846_v42  ;;  %v1848_v44 = vmul.f32 %v2383_v43, %v2945_v61 }
 0x5ec   : > { %1864 = vst [vmem:[%s2952_s12 + $0x78] sm:$0xff] %v1848_v44 }
 0x5ed PF: > { %s21_s17 = sadd.s32 1, %s2390_s17  }
 0x5ee   : > { %p18_p4 = scmp.ge.s32.totalorder %s21_s17, 6  }
 0x5f0   :  { %20 = sbr.rel (!%p18_p4) target bundleno = 1 (0x1), region = 94 }

</bundles_post_ra>
